<compile_context>
chip_gen: v5e
topology: v5e:2x2
jax: 0.10.0
libtpu: 0.0.40
codegen_flags: <defaults>
</compile_context>

<pallas_src>
import jax
import jax.numpy as jnp
from jax.experimental import pallas as pl
from jax.experimental.pallas import tpu as pltpu

PACK = 8          # batch rows packed per VMEM row (sublane height of one f32 vreg)
MAX_TILE_ROWS = 8192   # logical batch rows per grid step (VMEM-budget derived)


def mlp_kernel(x_ref, w1d_ref, b1_ref, w2_ref, b2_ref, w3_ref, b3d_ref, o_ref):
    """Fused 3-layer MLP (ReLU) on row-packed activations.

    x_ref:   (tb/8, 8*Din)            packed input rows
    w1d_ref: (8*Din, 8*H1 + 8*Dout)   [kron(I8,w1) | kron(I8,wd)], bf16
    w2_ref:  (8*H1, 8*H2) bf16,  w3_ref: (8*H2, 8*Dout) bf16
    b*_ref:  (1, 8*width) f32 (b3d includes the down_sample bias)
    o_ref:   (tb/8, 8*Dout)           packed output rows
    """
    h1p = b1_ref.shape[1]                      # 8 * H1 (static)

    xb = x_ref[...].astype(jnp.bfloat16)       # bf16 MXU operand, f32 accumulate

    # layer 1 + down_sample in a single MXU pass over x.
    t = jnp.dot(xb, w1d_ref[...], preferred_element_type=jnp.float32)
    h = jnp.maximum(t[:, :h1p] + b1_ref[...], 0.0)       # f32 bias add + ReLU
    skip = t[:, h1p:]                                      # packed x @ wd (bd is in b3d)

    # layer 2: Linear + ReLU
    h = jnp.dot(h.astype(jnp.bfloat16), w2_ref[...],
                preferred_element_type=jnp.float32) + b2_ref[...]
    h = jnp.maximum(h, 0.0)

    # layer 3 (output head) + residual skip
    out = jnp.dot(h.astype(jnp.bfloat16), w3_ref[...],
                  preferred_element_type=jnp.float32) + b3d_ref[...]
    out = out + skip

    o_ref[...] = out.astype(o_ref.dtype)


def _block_diag8(w):
    """kron(I_8, w): (din, dout) -> (8*din, 8*dout) block-diagonal."""
    return jnp.kron(jnp.eye(PACK, dtype=jnp.float32), w.astype(jnp.float32))


def _tile8(b):
    """(1, dout) -> (1, 8*dout) bias matching the packed activation layout."""
    return jnp.tile(b.astype(jnp.float32), (1, PACK))


def _choose_tile(B, cap=MAX_TILE_ROWS):
    """Logical batch rows per grid step.

    Single step when the batch fits the VMEM budget (best on 1-TC v5e/v6e, fine on v7x
    at small B).  Otherwise the largest multiple of 64 (keeps packed block (8,128)-
    aligned) dividing B, capped so the double-buffered footprint stays ~16 MiB.
    """
    if B <= cap:
        return B
    for t in range(cap - cap % 64, 63, -64):
        if B % t == 0:
            return t
    return B  # TODO(synk): pad / remainder step for awkward B instead of one giant tile


def mlp_forward(x, params, *, tb=None):
    """x: (B, D_in) f32 or bf16.  params: (D_in, D_out) weights, (1, D_out) biases (f32)."""
    B, Din = x.shape
    assert B % PACK == 0, "packed layout requires B % 8 == 0"
    if tb is None:
        tb = _choose_tile(B)
    assert B % tb == 0 and tb % PACK == 0 and (tb == B or tb % 64 == 0)

    # Wrapper-side packing / fusion (tiny; constant-folded under jit if params are static):
    #   w1d = [kron(I8, w1) | kron(I8, wd)]  bf16,  b3d = tile8(b3 + bd)
    w1d = jnp.concatenate(
        [_block_diag8(params["w1"]), _block_diag8(params["wd"])], axis=1
    ).astype(jnp.bfloat16)
    b1 = _tile8(params["b1"])
    w2 = _block_diag8(params["w2"]).astype(jnp.bfloat16)
    b2 = _tile8(params["b2"])
    w3 = _block_diag8(params["w3"]).astype(jnp.bfloat16)
    b3d = _tile8(params["b3"] + params["bd"])

    Dout = params["w3"].shape[1]
    x_p = x.reshape(B // PACK, PACK * Din)        # free, contiguity-preserving view

    full = lambda arr: pl.BlockSpec(arr.shape, lambda i: (0,) * arr.ndim)

    out_p = pl.pallas_call(
        mlp_kernel,
        out_shape=jax.ShapeDtypeStruct((B // PACK, PACK * Dout), jnp.float32),
        grid_spec=pltpu.PrefetchScalarGridSpec(
            num_scalar_prefetch=0,
            grid=(B // tb,),
            in_specs=[
                pl.BlockSpec((tb // PACK, PACK * Din), lambda i: (i, 0)),  # packed x tile
                full(w1d), full(b1),
                full(w2), full(b2),
                full(w3), full(b3d),
            ],
            out_specs=pl.BlockSpec((tb // PACK, PACK * Dout), lambda i: (i, 0)),
        ),
        compiler_params=pltpu.CompilerParams(
            dimension_semantics=("parallel",),       # megacore sharding on v7x at large B
            vmem_limit_bytes=32 * 1024 * 1024,       # fits the 8192-row tile on v5e too
        ),
    )(x_p, w1d, b1, w2, b2, w3, b3d)

    return out_p.reshape(B, Dout)                  # free, contiguity-preserving view


def init_params(key, d_in, latent, d_out):
    """Deterministic init mimicking nn.Linear's uniform(-1/sqrt(fan_in), 1/sqrt(fan_in))."""
    dims = [d_in] + list(latent) + [d_out]
    params = {}
    names = ["w1", "w2", "w3"]
    for idx, (fi, fo) in enumerate(zip(dims[:-1], dims[1:])):
        key, kw, kb = jax.random.split(key, 3)
        bound = 1.0 / jnp.sqrt(fi)
        params[names[idx]] = jax.random.uniform(kw, (fi, fo), jnp.float32, -bound, bound)
        params["b" + names[idx][1:]] = jax.random.uniform(kb, (1, fo), jnp.float32, -bound, bound)
    # down_sample: Linear(d_in -> d_out)
    key, kw, kb = jax.random.split(key, 3)
    bound = 1.0 / jnp.sqrt(d_in)
    params["wd"] = jax.random.uniform(kw, (d_in, d_out), jnp.float32, -bound, bound)
    params["bd"] = jax.random.uniform(kb, (1, d_out), jnp.float32, -bound, bound)
    return params


def mlp_reference(x, p):
    h = jnp.maximum(x @ p["w1"] + p["b1"], 0.0)
    h = jnp.maximum(h @ p["w2"] + p["b2"], 0.0)
    out = h @ p["w3"] + p["b3"]
    out = out + (x @ p["wd"] + p["bd"])
    return out


if __name__ == "__main__":
    # Config matching Model(input_shape=32, output_shape=16,
    #   args={'activation': 'relu', 'num_layer': 3, 'latent_shape': [64, 48],
    #         'down_sample': True})
    B, D_IN, LATENT, D_OUT = 128, 32, (64, 48), 16

    key = jax.random.PRNGKey(0)
    key, kx = jax.random.split(key)
    x = jax.random.normal(kx, (B, D_IN), dtype=jnp.float32)
    params = init_params(key, D_IN, LATENT, D_OUT)

    ref = mlp_reference(x, params)    # pure-f32 reference

    # Default path: single grid step (B=128 <= cap).
    out = jax.block_until_ready(mlp_forward(x, params))
    assert out.shape == (B, D_OUT)
    # bf16 MXU operands => loosen tolerance vs. the f32 reference.
    assert jnp.allclose(out, ref, atol=3e-2, rtol=3e-2), "mismatch vs reference (grid=1)"

    # Also exercise the multi-step (large-B) tiling path with a forced 64-row tile.
    out_tiled = jax.block_until_ready(mlp_forward(x, params, tb=64))
    assert jnp.allclose(out_tiled, ref, atol=3e-2, rtol=3e-2), "mismatch vs reference (grid=2)"

    print("KERNEL_OK")
</pallas_src>

<mosaic_0001>
module attributes {stable_mosaic.version = 11 : i64} {
  func.func @mlp_kernel(%arg0: i32, %arg1: memref<16x256xf32, #tpu.memory_space<vmem>>, %arg2: memref<256x640xbf16, #tpu.memory_space<vmem>>, %arg3: memref<1x512xf32, #tpu.memory_space<vmem>>, %arg4: memref<512x384xbf16, #tpu.memory_space<vmem>>, %arg5: memref<1x384xf32, #tpu.memory_space<vmem>>, %arg6: memref<384x128xbf16, #tpu.memory_space<vmem>>, %arg7: memref<1x128xf32, #tpu.memory_space<vmem>>, %arg8: memref<16x128xf32, #tpu.memory_space<vmem>>) attributes {dimension_semantics = [#tpu.dimension_semantics<parallel>], iteration_bounds = array<i64: 1>, scalar_prefetch = 0 : i64, scratch_operands = 0 : i64, tpu.core_type = #tpu.core_type<tc>, window_params = [{transform_indices = @transform_0, window_bounds = array<i64: 16, 256>}, {pipeline_mode = #tpu.pipeline_mode<synchronous>, transform_indices = @transform_1, window_bounds = array<i64: 256, 640>}, {pipeline_mode = #tpu.pipeline_mode<synchronous>, transform_indices = @transform_2, window_bounds = array<i64: 1, 512>}, {pipeline_mode = #tpu.pipeline_mode<synchronous>, transform_indices = @transform_3, window_bounds = array<i64: 512, 384>}, {pipeline_mode = #tpu.pipeline_mode<synchronous>, transform_indices = @transform_4, window_bounds = array<i64: 1, 384>}, {pipeline_mode = #tpu.pipeline_mode<synchronous>, transform_indices = @transform_5, window_bounds = array<i64: 384, 128>}, {pipeline_mode = #tpu.pipeline_mode<synchronous>, transform_indices = @transform_6, window_bounds = array<i64: 1, 128>}, {transform_indices = @transform_7, window_bounds = array<i64: 16, 128>}]} {
    %c0 = arith.constant 0 : index
    %c0_0 = arith.constant 0 : index
    %0 = vector.load %arg1[%c0, %c0_0] : memref<16x256xf32, #tpu.memory_space<vmem>>, vector<16x256xf32>
    %1 = arith.truncf %0 : vector<16x256xf32> to vector<16x256xbf16>
    %c0_1 = arith.constant 0 : index
    %c0_2 = arith.constant 0 : index
    %2 = vector.load %arg2[%c0_1, %c0_2] : memref<256x640xbf16, #tpu.memory_space<vmem>>, vector<256x640xbf16>
    %cst = arith.constant dense<0.000000e+00> : vector<16x640xf32>
    %3 = tpu.matmul %1, %2, %cst {dimension_numbers = #tpu.dot_dimension_numbers<[1], [0], [0], [1], [0, 0, 1, 1], [], []>} : vector<16x256xbf16>, vector<256x640xbf16>, vector<16x640xf32> -> vector<16x640xf32>
    %4 = vector.extract_strided_slice %3 {offsets = [0, 0], sizes = [16, 512], strides = [1, 1]} : vector<16x640xf32> to vector<16x512xf32>
    %c0_3 = arith.constant 0 : index
    %c0_4 = arith.constant 0 : index
    %5 = vector.load %arg3[%c0_3, %c0_4] : memref<1x512xf32, #tpu.memory_space<vmem>>, vector<1x512xf32>
    %6 = vector.broadcast %5 : vector<1x512xf32> to vector<16x512xf32>
    %7 = arith.addf %4, %6 : vector<16x512xf32>
    %cst_5 = arith.constant 0.000000e+00 : f32
    %8 = vector.broadcast %cst_5 : f32 to vector<16x512xf32>
    %9 = arith.maximumf %7, %8 : vector<16x512xf32>
    %10 = vector.extract_strided_slice %3 {offsets = [0, 512], sizes = [16, 128], strides = [1, 1]} : vector<16x640xf32> to vector<16x128xf32>
    %11 = arith.truncf %9 : vector<16x512xf32> to vector<16x512xbf16>
    %c0_6 = arith.constant 0 : index
    %c0_7 = arith.constant 0 : index
    %12 = vector.load %arg4[%c0_6, %c0_7] : memref<512x384xbf16, #tpu.memory_space<vmem>>, vector<512x384xbf16>
    %cst_8 = arith.constant dense<0.000000e+00> : vector<16x384xf32>
    %13 = tpu.matmul %11, %12, %cst_8 {dimension_numbers = #tpu.dot_dimension_numbers<[1], [0], [0], [1], [0, 0, 1, 1], [], []>} : vector<16x512xbf16>, vector<512x384xbf16>, vector<16x384xf32> -> vector<16x384xf32>
    %c0_9 = arith.constant 0 : index
    %c0_10 = arith.constant 0 : index
    %14 = vector.load %arg5[%c0_9, %c0_10] : memref<1x384xf32, #tpu.memory_space<vmem>>, vector<1x384xf32>
    %15 = vector.broadcast %14 : vector<1x384xf32> to vector<16x384xf32>
    %16 = arith.addf %13, %15 : vector<16x384xf32>
    %cst_11 = arith.constant 0.000000e+00 : f32
    %17 = vector.broadcast %cst_11 : f32 to vector<16x384xf32>
    %18 = arith.maximumf %16, %17 : vector<16x384xf32>
    %19 = arith.truncf %18 : vector<16x384xf32> to vector<16x384xbf16>
    %c0_12 = arith.constant 0 : index
    %c0_13 = arith.constant 0 : index
    %20 = vector.load %arg6[%c0_12, %c0_13] : memref<384x128xbf16, #tpu.memory_space<vmem>>, vector<384x128xbf16>
    %cst_14 = arith.constant dense<0.000000e+00> : vector<16x128xf32>
    %21 = tpu.matmul %19, %20, %cst_14 {dimension_numbers = #tpu.dot_dimension_numbers<[1], [0], [0], [1], [0, 0, 1, 1], [], []>} : vector<16x384xbf16>, vector<384x128xbf16>, vector<16x128xf32> -> vector<16x128xf32>
    %c0_15 = arith.constant 0 : index
    %c0_16 = arith.constant 0 : index
    %22 = vector.load %arg7[%c0_15, %c0_16] : memref<1x128xf32, #tpu.memory_space<vmem>>, vector<1x128xf32>
    %23 = vector.broadcast %22 : vector<1x128xf32> to vector<16x128xf32>
    %24 = arith.addf %21, %23 : vector<16x128xf32>
    %25 = arith.addf %24, %10 : vector<16x128xf32>
    %c0_17 = arith.constant 0 : index
    %c0_18 = arith.constant 0 : index
    %26 = vector.load %arg8[%c0_17, %c0_18] : memref<16x128xf32, #tpu.memory_space<vmem>>, vector<16x128xf32>
    tpu.vector_store %arg8[%c0_17, %c0_18], %25 {strides = array<i32>} : memref<16x128xf32, #tpu.memory_space<vmem>>, vector<16x128xf32>,
    return
  }
  func.func @transform_0(%arg0: i32) -> (i32, i32) {
    %c0_i32 = arith.constant 0 : i32
    %c0_i32_0 = arith.constant 0 : i32
    return %arg0, %c0_i32 : i32, i32
  }
  func.func @transform_1(%arg0: i32) -> (i32, i32) {
    %c0_i32 = arith.constant 0 : i32
    %c0_i32_0 = arith.constant 0 : i32
    %c0_i32_1 = arith.constant 0 : i32
    return %c0_i32, %c0_i32_0 : i32, i32
  }
  func.func @transform_2(%arg0: i32) -> (i32, i32) {
    %c0_i32 = arith.constant 0 : i32
    %c0_i32_0 = arith.constant 0 : i32
    %c0_i32_1 = arith.constant 0 : i32
    return %c0_i32, %c0_i32_0 : i32, i32
  }
  func.func @transform_3(%arg0: i32) -> (i32, i32) {
    %c0_i32 = arith.constant 0 : i32
    %c0_i32_0 = arith.constant 0 : i32
    %c0_i32_1 = arith.constant 0 : i32
    return %c0_i32, %c0_i32_0 : i32, i32
  }
  func.func @transform_4(%arg0: i32) -> (i32, i32) {
    %c0_i32 = arith.constant 0 : i32
    %c0_i32_0 = arith.constant 0 : i32
    %c0_i32_1 = arith.constant 0 : i32
    return %c0_i32, %c0_i32_0 : i32, i32
  }
  func.func @transform_5(%arg0: i32) -> (i32, i32) {
    %c0_i32 = arith.constant 0 : i32
    %c0_i32_0 = arith.constant 0 : i32
    %c0_i32_1 = arith.constant 0 : i32
    return %c0_i32, %c0_i32_0 : i32, i32
  }
  func.func @transform_6(%arg0: i32) -> (i32, i32) {
    %c0_i32 = arith.constant 0 : i32
    %c0_i32_0 = arith.constant 0 : i32
    %c0_i32_1 = arith.constant 0 : i32
    return %c0_i32, %c0_i32_0 : i32, i32
  }
  func.func @transform_7(%arg0: i32) -> (i32, i32) {
    %c0_i32 = arith.constant 0 : i32
    %c0_i32_0 = arith.constant 0 : i32
    return %arg0, %c0_i32 : i32, i32
  }
}

</mosaic_0001>

<bundles_post_ra>
// kernel: tpu_custom_call.1
= control target key start
LH: loop header
LB: loop body
LE: loop exit
PB: predicated region body
PF: predicated region fallthrough
CT: control target
= control target key end

     0   :  { %12 = vsyncpa [#allocation3], 0  ;;  %s3177_s0 = inlined_call_operand.hbm [shape: f32[16,256], index: 0, kind: input, shape index: {}]   ;;  %s3178_s1 = inlined_call_operand.hbm [shape: bf16[256,640], index: 1, kind: input, shape index: {}]   ;;  %s3179_s2 = inlined_call_operand.hbm [shape: f32[1,512], index: 2, kind: input, shape index: {}]   ;;  %s3180_s3 = inlined_call_operand.hbm [shape: bf16[512,384], index: 3, kind: input, shape index: {}]   ;;  %s3181_s4 = inlined_call_operand.vmem [shape: f32[1,384], index: 4, kind: input, shape index: {}]   ;;  %s3182_s5 = inlined_call_operand.hbm [shape: bf16[384,128], index: 5, kind: input, shape index: {}]   ;;  %s3183_s6 = inlined_call_operand.vmem [shape: f32[1,128], index: 6, kind: input, shape index: {}]   ;;  %s3184_s7 = inlined_call_operand.hbm [shape: f32[16,128], index: 7, kind: output, shape index: {}]  }
   0x1   :  { %13 = vsyncpa [#allocation6], 0 }
   0x2   :  { %14 = vsyncpa [#allocation9], 0  ;;  %s33_s26 = sshll.u32 %s3178_s1, 4  ;;  %s34_s26 = int_to_ptr.hbm [resolvable:$true] %s33_s26 }
   0x3   :  { %15 = vsyncpa [#allocation4], 0  ;;  %s3048_s27 = smov [#allocation5]   ;;  %s57_s8 = sshll.u32 %s3180_s3, 4  ;;  %s58_s8 = int_to_ptr.hbm [resolvable:$true] %s57_s8 }
   0x4   :  { %s35_s28 = sshll.u32 %s3048_s27, 4  ;;  %s3049_s9 = smov 320   ;;  %s36_s28 = int_to_ptr.vmem [resolvable:$true] %s35_s28 }
   0x5   :  { %s3050_s10 = smov 20   ;;  %s3051_s11 = smov [#allocation8]  }
   0x6   :  { %41 = dma.hbm_to_vmem [thread:$0]  %s34_s26, 10240, %s36_s28, [#allocation6], %s3049_s9, %s3049_s9, %s3050_s10  }
   0x7   :  { %s59_s12 = sshll.u32 %s3051_s11, 4  ;;  %s3052_s13 = smov 192   ;;  %s60_s12 = int_to_ptr.vmem [resolvable:$true] %s59_s12 }
   0x8   :  { %s3053_s14 = smov 12   ;;  %s20_s16 = sshll.u32 %s3177_s0, 4  ;;  %s21_s16 = int_to_ptr.hbm [resolvable:$true] %s20_s16 }
   0x9   :  { %65 = dma.hbm_to_vmem [thread:$0]  %s58_s8, 12288, %s60_s12, [#allocation9], %s3052_s13, %s3052_s13, %s3053_s14  }
   0xa   :  { %s3054_s17 = smov [#allocation2]   ;;  %s47_s20 = sshll.u32 %s3179_s2, 4  ;;  %s48_s20 = int_to_ptr.hbm [resolvable:$true] %s47_s20 }
   0xb   :  { %s22_s18 = sshll.u32 %s3054_s17, 4  ;;  %s3055_s21 = smov 256   ;;  %s23_s18 = int_to_ptr.vmem [resolvable:$true] %s22_s18 }
   0xc   :  { %s3056_s22 = smov 16   ;;  %s3057_s23 = smov [#allocation7]  }
   0xd   :  { %28 = dma.hbm_to_vmem [thread:$0]  %s21_s16, 512, %s23_s18, [#allocation3], %s3055_s21, %s3055_s21, %s3056_s22  }
   0xe   :  { %s49_s24 = sshll.u32 %s3057_s23, 4  ;;  %s72_s27 = sshll.u32 %s3182_s5, 4  ;;  %s50_s24 = int_to_ptr.vmem [resolvable:$true] %s49_s24  ;;  %s73_s27 = int_to_ptr.hbm [resolvable:$true] %s72_s27 }
   0xf   :  { %52 = dma.hbm_to_vmem [thread:$0]  %s48_s20, 64, %s50_s24, [#allocation6]  }
  0x10   :  { %s3058_s0 = smov [#allocation10]   ;;  %s3059_s29 = smov 64  }
  0x11   :  { %s74_s28 = sshll.u32 %s3058_s0, 4  ;;  %s3060_s30 = smov 4   ;;  %s75_s28 = int_to_ptr.vmem [resolvable:$true] %s74_s28 }
  0x12   :  { %80 = dma.hbm_to_vmem [thread:$0]  %s73_s27, 3072, %s75_s28, [#allocation9], %s3059_s29, %s3059_s29, %s3060_s30  }
  0x13   :  { %3040 = dma.done.wait [#allocation3], 512  }
  0x14   :  { %3041 = vsyncadd [#allocation3], 4294966784 }
  0x15   :  { %3042 = dma.done.wait [#allocation6], 10304  }
  0x16   :  { %3043 = vsyncadd [#allocation6], 4294956992 }
  0x17   :  { %3044 = dma.done.wait [#allocation9], 15360  }
  0x18   :  { %3045 = vsyncadd [#allocation9], 4294951936  ;;  %v2021_v0 = vld [vmem:[#allocation5 + $0x118] sm:$0xf]  ;;  %v2716_v1 = vld [vmem:[#allocation5 + $0x128] sm:$0xf0] }
  0x19   :  { %v2181_v2 = vld [vmem:[#allocation5 + $0x258] sm:$0xf]  ;;  %v2022_v3 = vor.u32 %v2716_v1, %v2021_v0  ;;  %v2756_v4 = vld [vmem:[#allocation5 + $0x268] sm:$0xf0]  ;;  %v2714_v5 = vld [vmem:[#allocation5 + $0x11c] sm:$0xf] }
  0x1a   :  { %v2023_v6 = vld [vmem:[#allocation5 + $0x12c] sm:$0xf0]  ;;  %v2182_v7 = vor.u32 %v2756_v4, %v2181_v2  ;;  %v2754_v9 = vld [vmem:[#allocation5 + $0x25c] sm:$0xf]  ;;  %v2711_v13 = vld [vmem:[#allocation5 + $0x100] sm:$0xf0] }
  0x1b   :  { %v2026_v8 = vor.u32 %v2714_v5, %v2023_v6  ;;  %v2183_v10 = vld [vmem:[#allocation5 + $0x26c] sm:$0xf0]  ;;  %621 = vmatpush.bf16.msra.mxu0 %v2022_v3  ;;  %v2751_v15 = vld [vmem:[#allocation5 + $0x240] sm:$0xf0]  ;;  %v2709_v18 = vld [vmem:[#allocation5 + $0xf4] sm:$0xf] }
  0x1c   :  { %v2001_v11 = vld [vmem:[#allocation5 + $0xf0] sm:$0xf]  ;;  %v2186_v12 = vor.u32 %v2754_v9, %v2183_v10  ;;  %635 = vmatpush.bf16.msra.mxu1 %v2182_v7  ;;  %v2003_v19 = vld [vmem:[#allocation5 + $0x104] sm:$0xf0]  ;;  %v2749_v20 = vld [vmem:[#allocation5 + $0x234] sm:$0xf] }
  0x1d   :  { %v2161_v14 = vld [vmem:[#allocation5 + $0x230] sm:$0xf]  ;;  %649 = vmatpush.bf16.msra.mxu2 %v2026_v8  ;;  %v2002_v16 = vor.u32 %v2711_v13, %v2001_v11  ;;  %v2006_v21 = vor.u32 %v2709_v18, %v2003_v19  ;;  %v2163_v22 = vld [vmem:[#allocation5 + $0x244] sm:$0xf0]  ;;  %v2706_v24 = vld [vmem:[#allocation5 + $0xd8] sm:$0xf0] }
  0x1e   :  { %v2162_v17 = vor.u32 %v2751_v15, %v2161_v14  ;;  %663 = vmatpush.bf16.msra.mxu3 %v2186_v12  ;;  %v1981_v23 = vld [vmem:[#allocation5 + $0xc8] sm:$0xf]  ;;  %v2166_v25 = vor.u32 %v2749_v20, %v2163_v22  ;;  %v2746_v27 = vld [vmem:[#allocation5 + $0x218] sm:$0xf0]  ;;  %v2704_v28 = vld [vmem:[#allocation5 + $0xcc] sm:$0xf] }
  0x1f   :  { %v2141_v26 = vld [vmem:[#allocation5 + $0x208] sm:$0xf]  ;;  %622 = vmatpush.bf16.msra.mxu0 %v2002_v16  ;;  %v1982_v29 = vor.u32 %v2706_v24, %v1981_v23  ;;  %v1983_v30 = vld [vmem:[#allocation5 + $0xdc] sm:$0xf0]  ;;  %v2744_v31 = vld [vmem:[#allocation5 + $0x20c] sm:$0xf] }
  0x20   :  { %v2143_v32 = vld [vmem:[#allocation5 + $0x21c] sm:$0xf0]  ;;  %636 = vmatpush.bf16.msra.mxu1 %v2162_v17  ;;  %v2142_v33 = vor.u32 %v2746_v27, %v2141_v26  ;;  %v1986_v34 = vor.u32 %v2704_v28, %v1983_v30  ;;  %v2701_v36 = vld [vmem:[#allocation5 + $0xb0] sm:$0xf0]  ;;  %v2699_v40 = vld [vmem:[#allocation5 + $0xa4] sm:$0xf] }
  0x21   :  { %650 = vmatpush.bf16.msra.mxu2 %v2006_v21  ;;  %v1961_v35 = vld [vmem:[#allocation5 + $0xa0] sm:$0xf]  ;;  %v2146_v38 = vor.u32 %v2744_v31, %v2143_v32  ;;  %v2741_v39 = vld [vmem:[#allocation5 + $0x1f0] sm:$0xf0]  ;;  %v1963_v41 = vld [vmem:[#allocation5 + $0xb4] sm:$0xf0] }
  0x22   :  { %v2121_v37 = vld [vmem:[#allocation5 + $0x1e0] sm:$0xf]  ;;  %664 = vmatpush.bf16.msra.mxu3 %v2166_v25  ;;  %v2739_v42 = vld [vmem:[#allocation5 + $0x1e4] sm:$0xf]  ;;  %v2123_v43 = vld [vmem:[#allocation5 + $0x1f4] sm:$0xf0]  ;;  %v1962_v44 = vor.u32 %v2701_v36, %v1961_v35  ;;  %v1966_v46 = vor.u32 %v2699_v40, %v1963_v41 }
  0x23   :  { %623 = vmatpush.bf16.msra.mxu0 %v1982_v29  ;;  %v2122_v45 = vor.u32 %v2741_v39, %v2121_v37  ;;  %v1941_v47 = vld [vmem:[#allocation5 + $0x78] sm:$0xf]  ;;  %v2696_v48 = vld [vmem:[#allocation5 + $0x88] sm:$0xf0]  ;;  %v2126_v50 = vor.u32 %v2739_v42, %v2123_v43  ;;  %v2694_v52 = vld [vmem:[#allocation5 + $0x7c] sm:$0xf] }
  0x24   :  { %637 = vmatpush.bf16.msra.mxu1 %v2142_v33  ;;  %v2101_v49 = vld [vmem:[#allocation5 + $0x1b8] sm:$0xf]  ;;  %v2736_v51 = vld [vmem:[#allocation5 + $0x1c8] sm:$0xf0]  ;;  %v1943_v53 = vld [vmem:[#allocation5 + $0x8c] sm:$0xf0]  ;;  %v1942_v56 = vor.u32 %v2696_v48, %v1941_v47 }
  0x25   :  { %651 = vmatpush.bf16.msra.mxu2 %v1986_v34  ;;  %v2734_v54 = vld [vmem:[#allocation5 + $0x1bc] sm:$0xf]  ;;  %v2103_v55 = vld [vmem:[#allocation5 + $0x1cc] sm:$0xf0]  ;;  %v2102_v57 = vor.u32 %v2736_v51, %v2101_v49  ;;  %v1946_v58 = vor.u32 %v2694_v52, %v1943_v53  ;;  %v2691_v60 = vld [vmem:[#allocation5 + $0x60] sm:$0xf0] }
  0x26   :  { %665 = vmatpush.bf16.msra.mxu3 %v2146_v38  ;;  %v1921_v59 = vld [vmem:[#allocation5 + $0x50] sm:$0xf]  ;;  %v2106_v62 = vor.u32 %v2734_v54, %v2103_v55  ;;  %v2731_v63 = vld [vmem:[#allocation5 + $0x1a0] sm:$0xf0]  ;;  %v2689_v0 = vld [vmem:[#allocation5 + $0x54] sm:$0xf] }
  0x27   :  { %624 = vmatpush.bf16.msra.mxu0 %v1962_v44  ;;  %v2081_v61 = vld [vmem:[#allocation5 + $0x190] sm:$0xf]  ;;  %v1923_v1 = vld [vmem:[#allocation5 + $0x64] sm:$0xf0]  ;;  %v2729_v2 = vld [vmem:[#allocation5 + $0x194] sm:$0xf]  ;;  %v1922_v4 = vor.u32 %v2691_v60, %v1921_v59 }
  0x28   :  { %638 = vmatpush.bf16.msra.mxu1 %v2122_v45  ;;  %v2083_v3 = vld [vmem:[#allocation5 + $0x1a4] sm:$0xf0]  ;;  %v2082_v5 = vor.u32 %v2731_v63, %v2081_v61  ;;  %v1926_v6 = vor.u32 %v2689_v0, %v1923_v1  ;;  %v2686_v8 = vld [vmem:[#allocation5 + $0x38] sm:$0xf0]  ;;  %v2684_v12 = vld [vmem:[#allocation5 + $0x2c] sm:$0xf] }
  0x29   :  { %652 = vmatpush.bf16.msra.mxu2 %v1966_v46  ;;  %v1901_v7 = vld [vmem:[#allocation5 + $0x28] sm:$0xf]  ;;  %v2086_v10 = vor.u32 %v2729_v2, %v2083_v3  ;;  %v2726_v11 = vld [vmem:[#allocation5 + $0x178] sm:$0xf0]  ;;  %v1903_v13 = vld [vmem:[#allocation5 + $0x3c] sm:$0xf0] }
  0x2a   :  { %666 = vmatpush.bf16.msra.mxu3 %v2126_v50  ;;  %v2061_v9 = vld [vmem:[#allocation5 + $0x168] sm:$0xf]  ;;  %v2724_v14 = vld [vmem:[#allocation5 + $0x16c] sm:$0xf]  ;;  %v2063_v15 = vld [vmem:[#allocation5 + $0x17c] sm:$0xf0]  ;;  %v1902_v16 = vor.u32 %v2686_v8, %v1901_v7  ;;  %v1906_v21 = vor.u32 %v2684_v12, %v1903_v13 }
  0x2b   :  { %625 = vmatpush.bf16.msra.mxu0 %v1942_v56  ;;  %v1881_v17 = vld [vmem:[#allocation5] sm:$0xf]  ;;  %v2681_v18 = vld [vmem:[#allocation5 + $0x10] sm:$0xf0]  ;;  %v2062_v20 = vor.u32 %v2726_v11, %v2061_v9  ;;  %v2679_v23 = vld [vmem:[#allocation5 + $0x4] sm:$0xf]  ;;  %v2066_v25 = vor.u32 %v2724_v14, %v2063_v15 }
  0x2c   :  { %639 = vmatpush.bf16.msra.mxu1 %v2102_v57  ;;  %v2041_v19 = vld [vmem:[#allocation5 + $0x140] sm:$0xf]  ;;  %v2721_v22 = vld [vmem:[#allocation5 + $0x150] sm:$0xf0]  ;;  %v1883_v24 = vld [vmem:[#allocation5 + $0x14] sm:$0xf0]  ;;  %v1882_v32 = vor.u32 %v2681_v18, %v1881_v17 }
  0x2d   :  { %653 = vmatpush.bf16.msra.mxu2 %v1946_v58  ;;  %v2719_v26 = vld [vmem:[#allocation5 + $0x144] sm:$0xf]  ;;  %v2043_v27 = vld [vmem:[#allocation5 + $0x154] sm:$0xf0]  ;;  %v2029_v28 = vld [vmem:[#allocation5 + $0x120] sm:$0xf]  ;;  %v2042_v36 = vor.u32 %v2721_v22, %v2041_v19  ;;  %v1886_v37 = vor.u32 %v2679_v23, %v1883_v24 }
  0x2e   :  { %667 = vmatpush.bf16.msra.mxu3 %v2106_v62  ;;  %v2717_v29 = vld [vmem:[#allocation5 + $0x130] sm:$0xf0]  ;;  %v2189_v30 = vld [vmem:[#allocation5 + $0x260] sm:$0xf]  ;;  %v2715_v33 = vld [vmem:[#allocation5 + $0x124] sm:$0xf]  ;;  %v2046_v41 = vor.u32 %v2719_v26, %v2043_v27 }
  0x2f   :  { %626 = vmatpush.bf16.msra.mxu0 %v1922_v4  ;;  %v2757_v31 = vld [vmem:[#allocation5 + $0x270] sm:$0xf0]  ;;  %v2031_v34 = vld [vmem:[#allocation5 + $0x134] sm:$0xf0]  ;;  %v2755_v35 = vld [vmem:[#allocation5 + $0x264] sm:$0xf]  ;;  %v2030_v42 = vor.u32 %v2717_v29, %v2029_v28 }
  0x30   :  { %640 = vmatpush.bf16.msra.mxu1 %v2082_v5  ;;  %v2191_v38 = vld [vmem:[#allocation5 + $0x274] sm:$0xf0]  ;;  %v103_v39 = vld [vmem:[#allocation2] sm:$0xff]  ;;  %v105_v40 = vld [vmem:[#allocation2 + $0x10] sm:$0xff]  ;;  %v2190_v45 = vor.u32 %v2757_v31, %v2189_v30  ;;  %v2034_v46 = vor.u32 %v2715_v33, %v2031_v34  ;;  %s3061_s9 = smov [#allocation11]   ;;  %s1864_s13 = sshll.u32 %s3184_s7, 4  ;;  %s1865_s13 = int_to_ptr.hbm [resolvable:$true] %s1864_s13 }
  0x31   :  { %654 = vmatpush.bf16.msra.mxu2 %v1926_v6  ;;  %v104_v43 = vld [vmem:[#allocation2 + $0x8] sm:$0xff]  ;;  %v106_v44 = vld [vmem:[#allocation2 + $0x18] sm:$0xff]  ;;  %v2194_v50 = vor.u32 %v2755_v35, %v2191_v38  ;;  %v3119_v51 = vpack.c.bf16 %v105_v40, %v103_v39  ;;  %v2011_v54 = vld [vmem:[#allocation5 + $0x10c] sm:$0xf0]  ;;  %s1862_s10 = sshll.u32 %s3061_s9, 4  ;;  %s3063_s14 = smov 8   ;;  %s1863_s10 = int_to_ptr.vmem [resolvable:$true] %s1862_s10 }
  0x32   :  { %668 = vmatpush.bf16.msra.mxu3 %v2086_v10  ;;  %v2009_v47 = vld [vmem:[#allocation5 + $0xf8] sm:$0xf]  ;;  %v2712_v48 = vld [vmem:[#allocation5 + $0x108] sm:$0xf0]  ;;  %v2710_v53 = vld [vmem:[#allocation5 + $0xfc] sm:$0xf]  ;;  %v3121_v55 = vpack.c.bf16 %v106_v44, %v104_v43 }
  0x33   :  { %627 = vmatpush.bf16.msra.mxu0 %v1902_v16  ;;  %v2169_v49 = vld [vmem:[#allocation5 + $0x238] sm:$0xf]  ;;  %v2752_v52 = vld [vmem:[#allocation5 + $0x248] sm:$0xf0]  ;;  %v2750_v56 = vld [vmem:[#allocation5 + $0x23c] sm:$0xf]  ;;  %v2010_v58 = vor.u32 %v2712_v48, %v2009_v47  ;;  %v2014_v60 = vor.u32 %v2710_v53, %v2011_v54 }
  0x34   :  { %641 = vmatpush.bf16.msra.mxu1 %v2062_v20  ;;  %v2171_v57 = vld [vmem:[#allocation5 + $0x24c] sm:$0xf0]  ;;  %v2170_v59 = vor.u32 %v2752_v52, %v2169_v49  ;;  %v2707_v62 = vld [vmem:[#allocation5 + $0xe0] sm:$0xf0]  ;;  %v2705_v2 = vld [vmem:[#allocation5 + $0xd4] sm:$0xf] }
  0x35   :  { %655 = vmatpush.bf16.msra.mxu2 %v1906_v21  ;;  %v1989_v61 = vld [vmem:[#allocation5 + $0xd0] sm:$0xf]  ;;  %v2174_v0 = vor.u32 %v2750_v56, %v2171_v57  ;;  %v2747_v1 = vld [vmem:[#allocation5 + $0x220] sm:$0xf0]  ;;  %v1991_v3 = vld [vmem:[#allocation5 + $0xe4] sm:$0xf0] }
  0x36   :  { %669 = vmatpush.bf16.msra.mxu3 %v2066_v25  ;;  %v2149_v63 = vld [vmem:[#allocation5 + $0x210] sm:$0xf]  ;;  %v2745_v4 = vld [vmem:[#allocation5 + $0x214] sm:$0xf]  ;;  %v2151_v5 = vld [vmem:[#allocation5 + $0x224] sm:$0xf0]  ;;  %v1990_v6 = vor.u32 %v2707_v62, %v1989_v61  ;;  %v1994_v8 = vor.u32 %v2705_v2, %v1991_v3 }
  0x37   :  { %628 = vmatpush.bf16.msra.mxu0 %v1882_v32  ;;  %v2150_v7 = vor.u32 %v2747_v1, %v2149_v63  ;;  %v1969_v9 = vld [vmem:[#allocation5 + $0xa8] sm:$0xf]  ;;  %v2702_v10 = vld [vmem:[#allocation5 + $0xb8] sm:$0xf0]  ;;  %v2154_v12 = vor.u32 %v2745_v4, %v2151_v5  ;;  %v2700_v14 = vld [vmem:[#allocation5 + $0xac] sm:$0xf] }
  0x38   :  { %642 = vmatpush.bf16.msra.mxu1 %v2042_v36  ;;  %v2129_v11 = vld [vmem:[#allocation5 + $0x1e8] sm:$0xf]  ;;  %v2742_v13 = vld [vmem:[#allocation5 + $0x1f8] sm:$0xf0]  ;;  %v1971_v15 = vld [vmem:[#allocation5 + $0xbc] sm:$0xf0]  ;;  %v1970_v18 = vor.u32 %v2702_v10, %v1969_v9 }
  0x39   :  { %656 = vmatpush.bf16.msra.mxu2 %v1886_v37  ;;  %v2740_v16 = vld [vmem:[#allocation5 + $0x1ec] sm:$0xf]  ;;  %v2131_v17 = vld [vmem:[#allocation5 + $0x1fc] sm:$0xf0]  ;;  %v2130_v19 = vor.u32 %v2742_v13, %v2129_v11  ;;  %v1974_v20 = vor.u32 %v2700_v14, %v1971_v15  ;;  %v2697_v22 = vld [vmem:[#allocation5 + $0x90] sm:$0xf0] }
  0x3a   :  { %670 = vmatpush.bf16.msra.mxu3 %v2046_v41  ;;  %629 = vmatmul.bf16.vlgmr.msra.gmra.mxu0 %v3119_v51  ;;  %v1949_v21 = vld [vmem:[#allocation5 + $0x80] sm:$0xf]  ;;  %v2134_v24 = vor.u32 %v2740_v16, %v2131_v17  ;;  %v2737_v25 = vld [vmem:[#allocation5 + $0x1d0] sm:$0xf0]  ;;  %v2695_v26 = vld [vmem:[#allocation5 + $0x84] sm:$0xf] }
  0x3b   :  { %677 = vmatpush.bf16.msrb.mxu0 %v2030_v42  ;;  %643 = vmatmul.bf16.vlgmr.msra.gmra.mxu1 %v3121_v55  ;;  %v2109_v23 = vld [vmem:[#allocation5 + $0x1c0] sm:$0xf]  ;;  %v1951_v27 = vld [vmem:[#allocation5 + $0x94] sm:$0xf0]  ;;  %v2735_v28 = vld [vmem:[#allocation5 + $0x1c4] sm:$0xf]  ;;  %v1950_v30 = vor.u32 %v2697_v22, %v1949_v21 }
  0x3c   :  { %691 = vmatpush.bf16.msrb.mxu1 %v2190_v45  ;;  %657 = vmatmul.bf16.vlgmr.msra.gmra.mxu2 %v3119_v51  ;;  %v2111_v29 = vld [vmem:[#allocation5 + $0x1d4] sm:$0xf0]  ;;  %v2110_v31 = vor.u32 %v2737_v25, %v2109_v23  ;;  %v1954_v32 = vor.u32 %v2695_v26, %v1951_v27  ;;  %v2692_v34 = vld [vmem:[#allocation5 + $0x68] sm:$0xf0]  ;;  %v2690_v38 = vld [vmem:[#allocation5 + $0x5c] sm:$0xf] }
  0x3d   :  { %705 = vmatpush.bf16.msrb.mxu2 %v2034_v46  ;;  %671 = vmatmul.bf16.vlgmr.msra.gmra.mxu3 %v3121_v55  ;;  %v1929_v33 = vld [vmem:[#allocation5 + $0x58] sm:$0xf]  ;;  %v2114_v36 = vor.u32 %v2735_v28, %v2111_v29  ;;  %v2732_v37 = vld [vmem:[#allocation5 + $0x1a8] sm:$0xf0]  ;;  %v1931_v39 = vld [vmem:[#allocation5 + $0x6c] sm:$0xf0] }
  0x3e   :  { %719 = vmatpush.bf16.msrb.mxu3 %v2194_v50  ;;  %v2089_v35 = vld [vmem:[#allocation5 + $0x198] sm:$0xf]  ;;  %v2730_v40 = vld [vmem:[#allocation5 + $0x19c] sm:$0xf]  ;;  %v2091_v41 = vld [vmem:[#allocation5 + $0x1ac] sm:$0xf0]  ;;  %v1930_v42 = vor.u32 %v2692_v34, %v1929_v33  ;;  %v1934_v44 = vor.u32 %v2690_v38, %v1931_v39 }
  0x3f   :  { %678 = vmatpush.bf16.msrb.mxu0 %v2010_v58  ;;  %v2090_v43 = vor.u32 %v2732_v37, %v2089_v35  ;;  %v1909_v45 = vld [vmem:[#allocation5 + $0x30] sm:$0xf]  ;;  %v2687_v46 = vld [vmem:[#allocation5 + $0x40] sm:$0xf0]  ;;  %v2094_v48 = vor.u32 %v2730_v40, %v2091_v41  ;;  %v2685_v50 = vld [vmem:[#allocation5 + $0x34] sm:$0xf] }
  0x40   :  { %692 = vmatpush.bf16.msrb.mxu1 %v2170_v59  ;;  %v2069_v47 = vld [vmem:[#allocation5 + $0x170] sm:$0xf]  ;;  %v2727_v49 = vld [vmem:[#allocation5 + $0x180] sm:$0xf0]  ;;  %v1911_v52 = vld [vmem:[#allocation5 + $0x44] sm:$0xf0]  ;;  %v1910_v56 = vor.u32 %v2687_v46, %v1909_v45 }
  0x41   :  { %706 = vmatpush.bf16.msrb.mxu2 %v2014_v60  ;;  %v2725_v53 = vld [vmem:[#allocation5 + $0x174] sm:$0xf]  ;;  %v2071_v54 = vld [vmem:[#allocation5 + $0x184] sm:$0xf0]  ;;  %v2070_v58 = vor.u32 %v2727_v49, %v2069_v47  ;;  %v1914_v59 = vor.u32 %v2685_v50, %v1911_v52  ;;  %v2682_v60 = vld [vmem:[#allocation5 + $0x18] sm:$0xf0] }
  0x42   :  { %720 = vmatpush.bf16.msrb.mxu3 %v2174_v0  ;;  %v1889_v57 = vld [vmem:[#allocation5 + $0x8] sm:$0xf]  ;;  %v2722_v62 = vld [vmem:[#allocation5 + $0x158] sm:$0xf0]  ;;  %v2074_v63 = vor.u32 %v2725_v53, %v2071_v54  ;;  %v2680_v0 = vld [vmem:[#allocation5 + $0xc] sm:$0xf] }
  0x43   :  { %679 = vmatpush.bf16.msrb.mxu0 %v1990_v6  ;;  %v2049_v61 = vld [vmem:[#allocation5 + $0x148] sm:$0xf]  ;;  %v1891_v1 = vld [vmem:[#allocation5 + $0x1c] sm:$0xf0]  ;;  %v2720_v2 = vld [vmem:[#allocation5 + $0x14c] sm:$0xf]  ;;  %v1890_v6 = vor.u32 %v2682_v60, %v1889_v57 }
  0x44   :  { %693 = vmatpush.bf16.msrb.mxu1 %v2150_v7  ;;  %v2051_v3 = vld [vmem:[#allocation5 + $0x15c] sm:$0xf0]  ;;  %v2037_v4 = vld [vmem:[#allocation5 + $0x128] sm:$0xf]  ;;  %v2718_v5 = vld [vmem:[#allocation5 + $0x138] sm:$0xf0]  ;;  %v2050_v9 = vor.u32 %v2722_v62, %v2049_v61  ;;  %v1894_v10 = vor.u32 %v2680_v0, %v1891_v1 }
  0x45   :  { %707 = vmatpush.bf16.msrb.mxu2 %v1994_v8  ;;  %v2285_v7 = vld [vmem:[#allocation8 + $0xa8] sm:$0xf]  ;;  %v2781_v8 = vld [vmem:[#allocation8 + $0xb0] sm:$0xf0]  ;;  %v2054_v11 = vor.u32 %v2720_v2, %v2051_v3  ;;  %v2017_v13 = vld [vmem:[#allocation5 + $0x100] sm:$0xf] }
  0x46   :  { %721 = vmatpush.bf16.msrb.mxu3 %v2154_v12  ;;  %v2038_v12 = vor.u32 %v2718_v5, %v2037_v4  ;;  %v2197_v14 = vld [vmem:[#allocation5 + $0x268] sm:$0xf]  ;;  %v2758_v15 = vld [vmem:[#allocation5 + $0x278] sm:$0xf0]  ;;  %v2286_v16 = vor.u32 %v2781_v8, %v2285_v7  ;;  %v2713_v17 = vld [vmem:[#allocation5 + $0x110] sm:$0xf0] }
  0x47   :  { %680 = vmatpush.bf16.msrb.mxu0 %v1970_v18  ;;  %v2381_v18 = vld [vmem:[#allocation8 + $0x168] sm:$0xf]  ;;  %v2778_v21 = vld [vmem:[#allocation8 + $0x98] sm:$0xf0]  ;;  %v2198_v22 = vor.u32 %v2758_v15, %v2197_v14  ;;  %v2018_v23 = vor.u32 %v2713_v17, %v2017_v13  ;;  %v1997_v25 = vld [vmem:[#allocation5 + $0xd8] sm:$0xf] }
  0x48   :  { %694 = vmatpush.bf16.msrb.mxu1 %v2130_v19  ;;  %v2805_v19 = vld [vmem:[#allocation8 + $0x170] sm:$0xf0]  ;;  %v2177_v26 = vld [vmem:[#allocation5 + $0x240] sm:$0xf]  ;;  %v2753_v27 = vld [vmem:[#allocation5 + $0x250] sm:$0xf0] }
  0x49   :  { %708 = vmatpush.bf16.msrb.mxu2 %v1974_v20  ;;  %v2273_v20 = vld [vmem:[#allocation8 + $0x90] sm:$0xf]  ;;  %v2708_v29 = vld [vmem:[#allocation5 + $0xe8] sm:$0xf0]  ;;  %v2775_v33 = vld [vmem:[#allocation8 + $0x80] sm:$0xf0]  ;;  %v2178_v34 = vor.u32 %v2753_v27, %v2177_v26 }
  0x4a   :  { %722 = vmatpush.bf16.msrb.mxu3 %v2134_v24  ;;  %v2382_v24 = vor.u32 %v2805_v19, %v2381_v18  ;;  %v2274_v28 = vor.u32 %v2778_v21, %v2273_v20  ;;  %v1998_v35 = vor.u32 %v2708_v29, %v1997_v25  ;;  %v1977_v37 = vld [vmem:[#allocation5 + $0xb0] sm:$0xf]  ;;  %v2157_v38 = vld [vmem:[#allocation5 + $0x218] sm:$0xf]  ;;  %v2748_v39 = vld [vmem:[#allocation5 + $0x228] sm:$0xf0] }
  0x4b   :  { %681 = vmatpush.bf16.msrb.mxu0 %v1950_v30  ;;  %v2369_v30 = vld [vmem:[#allocation8 + $0x150] sm:$0xf]  ;;  %v2703_v41 = vld [vmem:[#allocation5 + $0xc0] sm:$0xf0]  ;;  %v2772_v45 = vld [vmem:[#allocation8 + $0x68] sm:$0xf0]  ;;  %v2158_v46 = vor.u32 %v2748_v39, %v2157_v38 }
  0x4c   :  { %695 = vmatpush.bf16.msrb.mxu1 %v2110_v31  ;;  %v2802_v31 = vld [vmem:[#allocation8 + $0x158] sm:$0xf0]  ;;  %v1957_v47 = vld [vmem:[#allocation5 + $0x88] sm:$0xf]  ;;  %v2698_v50 = vld [vmem:[#allocation5 + $0x98] sm:$0xf0] }
  0x4d   :  { %709 = vmatpush.bf16.msrb.mxu2 %v1954_v32  ;;  %v2261_v32 = vld [vmem:[#allocation8 + $0x78] sm:$0xf]  ;;  %v2137_v52 = vld [vmem:[#allocation5 + $0x1f0] sm:$0xf]  ;;  %v2743_v53 = vld [vmem:[#allocation5 + $0x200] sm:$0xf0]  ;;  %v1958_v61 = vor.u32 %v2698_v50, %v1957_v47 }
  0x4e   :  { %723 = vmatpush.bf16.msrb.mxu3 %v2114_v36  ;;  %v2370_v36 = vor.u32 %v2802_v31, %v2369_v30  ;;  %v2262_v40 = vor.u32 %v2775_v33, %v2261_v32  ;;  %v2796_v57 = vld [vmem:[#allocation8 + $0x128] sm:$0xf0]  ;;  %v2138_v60 = vor.u32 %v2743_v53, %v2137_v52  ;;  %v2117_v0 = vld [vmem:[#allocation5 + $0x1c8] sm:$0xf]  ;;  %v2738_v1 = vld [vmem:[#allocation5 + $0x1d8] sm:$0xf0] }
  0x4f   :  { %682 = vmatpush.bf16.msrb.mxu0 %v1930_v42  ;;  %v2357_v42 = vld [vmem:[#allocation8 + $0x138] sm:$0xf]  ;;  %v2693_v3 = vld [vmem:[#allocation5 + $0x70] sm:$0xf0]  ;;  %v2333_v4 = vld [vmem:[#allocation8 + $0x108] sm:$0xf]  ;;  %v2118_v8 = vor.u32 %v2738_v1, %v2117_v0 }
  0x50   :  { %696 = vmatpush.bf16.msrb.mxu1 %v2090_v43  ;;  %v2799_v43 = vld [vmem:[#allocation8 + $0x140] sm:$0xf0]  ;;  %v2793_v5 = vld [vmem:[#allocation8 + $0x110] sm:$0xf0]  ;;  %v2766_v7 = vld [vmem:[#allocation8 + $0x38] sm:$0xf0] }
  0x51   :  { %710 = vmatpush.bf16.msrb.mxu2 %v1934_v44  ;;  %v2249_v44 = vld [vmem:[#allocation8 + $0x60] sm:$0xf]  ;;  %v2358_v49 = vor.u32 %v2799_v43, %v2357_v42  ;;  %v2733_v13 = vld [vmem:[#allocation5 + $0x1b0] sm:$0xf0]  ;;  %v2688_v15 = vld [vmem:[#allocation5 + $0x48] sm:$0xf0] }
  0x52   :  { %724 = vmatpush.bf16.msrb.mxu3 %v2094_v48  ;;  %v1978_v48 = vor.u32 %v2703_v41, %v1977_v37  ;;  %v2250_v54 = vor.u32 %v2772_v45, %v2249_v44  ;;  %v2790_v17 = vld [vmem:[#allocation8 + $0xf8] sm:$0xf0]  ;;  %v2213_v18 = vld [vmem:[#allocation8 + $0x18] sm:$0xf]  ;;  %v2763_v19 = vld [vmem:[#allocation8 + $0x20] sm:$0xf0] }
  0x53   :  { %683 = vmatpush.bf16.msrb.mxu0 %v1910_v56  ;;  %v2345_v56 = vld [vmem:[#allocation8 + $0x120] sm:$0xf]  ;;  %v1897_v21 = vld [vmem:[#allocation5 + $0x10] sm:$0xf]  ;;  %v2077_v25 = vld [vmem:[#allocation5 + $0x178] sm:$0xf]  ;;  %v2214_v27 = vor.u32 %v2763_v19, %v2213_v18 }
  0x54   :  { %697 = vmatpush.bf16.msrb.mxu1 %v2070_v58  ;;  %v2237_v58 = vld [vmem:[#allocation8 + $0x48] sm:$0xf]  ;;  %v2346_v62 = vor.u32 %v2796_v57, %v2345_v56  ;;  %v2309_v29 = vld [vmem:[#allocation8 + $0xd8] sm:$0xf]  ;;  %v2787_v30 = vld [vmem:[#allocation8 + $0xe0] sm:$0xf0] }
  0x55   :  { %711 = vmatpush.bf16.msrb.mxu2 %v1914_v59  ;;  %v2769_v59 = vld [vmem:[#allocation8 + $0x50] sm:$0xf0]  ;;  %v2728_v26 = vld [vmem:[#allocation5 + $0x188] sm:$0xf0]  ;;  %v2760_v31 = vld [vmem:[#allocation8 + $0x8] sm:$0xf0]  ;;  %v2310_v38 = vor.u32 %v2787_v30, %v2309_v29 }
  0x56   :  { %725 = vmatpush.bf16.msrb.mxu3 %v2074_v63  ;;  %v1937_v63 = vld [vmem:[#allocation5 + $0x60] sm:$0xf]  ;;  %v2238_v2 = vor.u32 %v2769_v59, %v2237_v58  ;;  %v2477_v32 = vld [vmem:[#allocation8 + $0x228] sm:$0xf]  ;;  %v2829_v33 = vld [vmem:[#allocation8 + $0x230] sm:$0xf0] }
  0x57   :  { %684 = vmatpush.bf16.msrb.mxu0 %v1890_v6  ;;  %v2225_v6 = vld [vmem:[#allocation8 + $0x30] sm:$0xf]  ;;  %v2723_v41 = vld [vmem:[#allocation5 + $0x160] sm:$0xf0]  ;;  %v2478_v44 = vor.u32 %v2829_v33, %v2477_v32  ;;  %v2784_v45 = vld [vmem:[#allocation8 + $0xc8] sm:$0xf0] }
  0x58   :  { %698 = vmatpush.bf16.msrb.mxu1 %v2050_v9  ;;  %v1938_v9 = vor.u32 %v2693_v3, %v1937_v63  ;;  %v2226_v14 = vor.u32 %v2766_v7, %v2225_v6  ;;  %v2465_v39 = vld [vmem:[#allocation8 + $0x210] sm:$0xf]  ;;  %v2297_v42 = vld [vmem:[#allocation8 + $0xc0] sm:$0xf]  ;;  %v2853_v47 = vld [vmem:[#allocation8 + $0x2f0] sm:$0xf0] }
  0x59   :  { %712 = vmatpush.bf16.msrb.mxu2 %v1894_v10  ;;  %v2334_v10 = vor.u32 %v2793_v5, %v2333_v4  ;;  %v2804_v50 = vld [vmem:[#allocation8 + $0x16c] sm:$0xf]  ;;  %v2383_v52 = vld [vmem:[#allocation8 + $0x174] sm:$0xf0]  ;;  %v2777_v53 = vld [vmem:[#allocation8 + $0x94] sm:$0xf]  ;;  %v2298_v57 = vor.u32 %v2784_v45, %v2297_v42 }
  0x5a   :  { %726 = vmatpush.bf16.msrb.mxu3 %v2054_v11  ;;  %685 = vmatmul.bf16.vlgmr.msrb.gmra.mxu0 %v3119_v51  ;;  %v1917_v11 = vld [vmem:[#allocation5 + $0x38] sm:$0xf]  ;;  %v2850_v63 = vld [vmem:[#allocation8 + $0x2d8] sm:$0xf0]  ;;  %v2823_v1 = vld [vmem:[#allocation8 + $0x200] sm:$0xf0] }
  0x5b   :  { %733 = vmatpush.bf16.msra.mxu0 %v2038_v12  ;;  %699 = vmatmul.bf16.vlgmr.msrb.gmra.mxu1 %v3121_v55  ;;  %v2097_v12 = vld [vmem:[#allocation5 + $0x1a0] sm:$0xf]  ;;  %v2371_v3 = vld [vmem:[#allocation8 + $0x15c] sm:$0xf0]  ;;  %v2263_v5 = vld [vmem:[#allocation8 + $0x84] sm:$0xf0] }
  0x5c   :  { %713 = vmatmul.bf16.vlgmr.msrb.gmra.mxu2 %v3119_v51  ;;  %747 = vmatpush.bf16.msra.mxu1 %v2198_v22  ;;  %v2098_v20 = vor.u32 %v2733_v13, %v2097_v12  ;;  %v1918_v22 = vor.u32 %v2688_v15, %v1917_v11  ;;  %v2774_v4 = vld [vmem:[#allocation8 + $0x7c] sm:$0xf]  ;;  %v2820_v11 = vld [vmem:[#allocation8 + $0x1e8] sm:$0xf0]  ;;  %v2771_v12 = vld [vmem:[#allocation8 + $0x64] sm:$0xf] }
  0x5d   :  { %1439 = vmatpush.bf16.msra.mxu2 %v2286_v16  ;;  %727 = vmatmul.bf16.vlgmr.msrb.gmra.mxu3 %v3121_v55  ;;  %v2321_v16 = vld [vmem:[#allocation8 + $0xf0] sm:$0xf]  ;;  %v2549_v15 = vld [vmem:[#allocation8 + $0x2b8] sm:$0xf]  ;;  %v2798_v18 = vld [vmem:[#allocation8 + $0x13c] sm:$0xf] }
  0x5e   :  { %1453 = vmatpush.bf16.msra.mxu3 %v2382_v24  ;;  %v2683_v24 = vld [vmem:[#allocation5 + $0x20] sm:$0xf0]  ;;  %v2359_v19 = vld [vmem:[#allocation8 + $0x144] sm:$0xf0]  ;;  %v2347_v30 = vld [vmem:[#allocation8 + $0x12c] sm:$0xf0] }
  0x5f   :  { %734 = vmatpush.bf16.msra.mxu0 %v2018_v23  ;;  %v2322_v23 = vor.u32 %v2790_v17, %v2321_v16  ;;  %v1898_v37 = vor.u32 %v2683_v24, %v1897_v21  ;;  %v2847_v16 = vld [vmem:[#allocation8 + $0x2c0] sm:$0xf0]  ;;  %v2429_v21 = vld [vmem:[#allocation8 + $0x1c8] sm:$0xf]  ;;  %v2239_v24 = vld [vmem:[#allocation8 + $0x54] sm:$0xf0] }
  0x60   :  { %748 = vmatpush.bf16.msra.mxu1 %v2178_v34  ;;  %v2780_v34 = vld [vmem:[#allocation8 + $0xac] sm:$0xf]  ;;  %v2550_v17 = vor.u32 %v2847_v16, %v2549_v15  ;;  %v2417_v32 = vld [vmem:[#allocation8 + $0x1b0] sm:$0xf]  ;;  %v2814_v33 = vld [vmem:[#allocation8 + $0x1b8] sm:$0xf0] }
  0x61   :  { %1440 = vmatpush.bf16.msra.mxu2 %v2274_v28  ;;  %v2201_v28 = vld [vmem:[#allocation8] sm:$0xf]  ;;  %v2335_v42 = vld [vmem:[#allocation8 + $0x114] sm:$0xf0]  ;;  %v2811_v45 = vld [vmem:[#allocation8 + $0x1a0] sm:$0xf0] }
  0x62   :  { %1454 = vmatpush.bf16.msra.mxu3 %v2370_v36  ;;  %v2078_v36 = vor.u32 %v2728_v26, %v2077_v25  ;;  %v2202_v43 = vor.u32 %v2760_v31, %v2201_v28  ;;  %v2537_v26 = vld [vmem:[#allocation8 + $0x2a0] sm:$0xf]  ;;  %v2795_v28 = vld [vmem:[#allocation8 + $0x124] sm:$0xf]  ;;  %v2299_v15 = vld [vmem:[#allocation8 + $0xcc] sm:$0xf0] }
  0x63   :  { %735 = vmatpush.bf16.msra.mxu0 %v1998_v35  ;;  %v2287_v35 = vld [vmem:[#allocation8 + $0xb4] sm:$0xf0]  ;;  %v2350_v31 = vor.u32 %v2795_v28, %v2347_v30  ;;  %v2852_v16 = vld [vmem:[#allocation8 + $0x2ec] sm:$0xf]  ;;  %v2846_v28 = vld [vmem:[#allocation8 + $0x2bc] sm:$0xf] }
  0x64   :  { %749 = vmatpush.bf16.msra.mxu1 %v2158_v46  ;;  %v2573_v46 = vld [vmem:[#allocation8 + $0x2e8] sm:$0xf] }
  0x65   :  { %1441 = vmatpush.bf16.msra.mxu2 %v2262_v40  ;;  %v2057_v40 = vld [vmem:[#allocation5 + $0x150] sm:$0xf]  ;;  %v2574_v58 = vor.u32 %v2853_v47, %v2573_v46  ;;  %v2762_v46 = vld [vmem:[#allocation8 + $0x1c] sm:$0xf] }
  0x66   :  { %1455 = vmatpush.bf16.msra.mxu3 %v2358_v49  ;;  %v2826_v49 = vld [vmem:[#allocation8 + $0x218] sm:$0xf0]  ;;  %v2058_v56 = vor.u32 %v2723_v41, %v2057_v40  ;;  %v2792_v40 = vld [vmem:[#allocation8 + $0x10c] sm:$0xf] }
  0x67   :  { %736 = vmatpush.bf16.msra.mxu0 %v1978_v48  ;;  %v2290_v48 = vor.u32 %v2780_v34, %v2287_v35  ;;  %v2466_v59 = vor.u32 %v2826_v49, %v2465_v39  ;;  %v2765_v34 = vld [vmem:[#allocation8 + $0x34] sm:$0xf]  ;;  %v2418_v35 = vor.u32 %v2814_v33, %v2417_v32  ;;  %v3133_v33 = vld [vmem:[#allocation7] sm:$0xf] }
  0x68   :  { %750 = vmatpush.bf16.msra.mxu1 %v2138_v60  ;;  %v2386_v60 = vor.u32 %v2804_v50, %v2383_v52  ;;  %v2841_v39 = vld [vmem:[#allocation8 + $0x290] sm:$0xf0]  ;;  %v2513_v50 = vld [vmem:[#allocation8 + $0x270] sm:$0xf]  ;;  %v2838_v52 = vld [vmem:[#allocation8 + $0x278] sm:$0xf0] }
  0x69   :  { %1442 = vmatpush.bf16.msra.mxu2 %v2250_v54  ;;  %v2275_v54 = vld [vmem:[#allocation8 + $0x9c] sm:$0xf0] }
  0x6a   :  { %1456 = vmatpush.bf16.msra.mxu3 %v2346_v62  ;;  %v2561_v62 = vld [vmem:[#allocation8 + $0x2d0] sm:$0xf]  ;;  %v2278_v0 = vor.u32 %v2777_v53, %v2275_v54  ;;  %v2789_v53 = vld [vmem:[#allocation8 + $0xf4] sm:$0xf]  ;;  %v2514_v54 = vor.u32 %v2838_v52, %v2513_v50 }
  0x6b   :  { %737 = vmatpush.bf16.msra.mxu0 %v1958_v61  ;;  %v2453_v61 = vld [vmem:[#allocation8 + $0x1f8] sm:$0xf]  ;;  %v2562_v6 = vor.u32 %v2850_v63, %v2561_v62  ;;  %v2203_v62 = vld [vmem:[#allocation8 + $0xc] sm:$0xf0]  ;;  %v2828_v63 = vld [vmem:[#allocation8 + $0x22c] sm:$0xf] }
  0x6c   :  { %751 = vmatpush.bf16.msra.mxu1 %v2118_v8  ;;  %v2454_v7 = vor.u32 %v2823_v1, %v2453_v61 }
  0x6d   :  { %1443 = vmatpush.bf16.msra.mxu2 %v2238_v2  ;;  %v2801_v2 = vld [vmem:[#allocation8 + $0x154] sm:$0xf] }
  0x6e   :  { %1457 = vmatpush.bf16.msra.mxu3 %v2334_v10  ;;  %v2374_v8 = vor.u32 %v2801_v2, %v2371_v3  ;;  %v2441_v10 = vld [vmem:[#allocation8 + $0x1e0] sm:$0xf]  ;;  %v2501_v3 = vld [vmem:[#allocation8 + $0x258] sm:$0xf] }
  0x6f   :  { %738 = vmatpush.bf16.msra.mxu0 %v1938_v9  ;;  %v2266_v9 = vor.u32 %v2774_v4, %v2263_v5  ;;  %v2442_v13 = vor.u32 %v2820_v11, %v2441_v10  ;;  %v2835_v4 = vld [vmem:[#allocation8 + $0x260] sm:$0xf0]  ;;  %v2786_v5 = vld [vmem:[#allocation8 + $0xdc] sm:$0xf]  ;;  %v2467_v10 = vld [vmem:[#allocation8 + $0x21c] sm:$0xf0] }
  0x70   :  { %752 = vmatpush.bf16.msra.mxu1 %v2098_v20  ;;  %v2362_v20 = vor.u32 %v2798_v18, %v2359_v19  ;;  %v2575_v18 = vld [vmem:[#allocation8 + $0x2f4] sm:$0xf0] }
  0x71   :  { %1444 = vmatpush.bf16.msra.mxu2 %v2226_v14  ;;  %v2578_v19 = vor.u32 %v2852_v16, %v2575_v18  ;;  %v2389_v18 = vld [vmem:[#allocation8 + $0x170] sm:$0xf] }
  0x72   :  { %1458 = vmatpush.bf16.msra.mxu3 %v2322_v23 }
  0x73   :  { %739 = vmatpush.bf16.msra.mxu0 %v1918_v22  ;;  %v2768_v22 = vld [vmem:[#allocation8 + $0x4c] sm:$0xf] }
  0x74   :  { %753 = vmatpush.bf16.msra.mxu1 %v2078_v36  ;;  %v2242_v25 = vor.u32 %v2768_v22, %v2239_v24  ;;  %v2227_v36 = vld [vmem:[#allocation8 + $0x3c] sm:$0xf0]  ;;  %v2849_v22 = vld [vmem:[#allocation8 + $0x2d4] sm:$0xf] }
  0x75   :  { %1445 = vmatpush.bf16.msra.mxu2 %v2214_v27  ;;  %v2844_v27 = vld [vmem:[#allocation8 + $0x2a8] sm:$0xf0] }
  0x76   :  { %1459 = vmatpush.bf16.msra.mxu3 %v2310_v38  ;;  %v2538_v29 = vor.u32 %v2844_v27, %v2537_v26  ;;  %v2525_v38 = vld [vmem:[#allocation8 + $0x288] sm:$0xf]  ;;  %v2443_v26 = vld [vmem:[#allocation8 + $0x1ec] sm:$0xf0] }
  0x77   :  { %740 = vmatpush.bf16.msra.mxu0 %v1898_v37  ;;  %v2230_v37 = vor.u32 %v2765_v34, %v2227_v36  ;;  %v2526_v41 = vor.u32 %v2841_v39, %v2525_v38  ;;  %v2816_v34 = vld [vmem:[#allocation8 + $0x1cc] sm:$0xf]  ;;  %v2539_v38 = vld [vmem:[#allocation8 + $0x2ac] sm:$0xf0] }
  0x78   :  { %754 = vmatpush.bf16.msra.mxu1 %v2058_v56  ;;  %v2323_v56 = vld [vmem:[#allocation8 + $0xfc] sm:$0xf0] }
  0x79   :  { %1446 = vmatpush.bf16.msra.mxu2 %v2202_v43  ;;  %v2338_v43 = vor.u32 %v2792_v40, %v2335_v42  ;;  %v763_v40 = vperm.slane %v3133_v33, 0  ;;  %v2813_v42 = vld [vmem:[#allocation8 + $0x1b4] sm:$0xf] }
  0x7a   :  { %741 = vmatmul.bf16.vlgmr.msra.gmra.mxu0 %v3119_v51  ;;  %1460 = vmatpush.bf16.msra.mxu3 %v2298_v57  ;;  %v2251_v51 = vld [vmem:[#allocation8 + $0x6c] sm:$0xf0]  ;;  %v2326_v57 = vor.u32 %v2789_v53, %v2323_v56  ;;  %v2407_v56 = vld [vmem:[#allocation8 + $0x1a4] sm:$0xf0] }
  0x7b   :  { %1467 = vmatpush.bf16.msrb.mxu0 %v2478_v44  ;;  %755 = vmatmul.bf16.vlgmr.msra.gmra.mxu1 %v3121_v55  ;;  %v2254_v14 = vor.u32 %v2771_v12, %v2251_v51  ;;  %v2817_v55 = vld [vmem:[#allocation8 + $0x1d0] sm:$0xf0]  ;;  %v2405_v44 = vld [vmem:[#allocation8 + $0x198] sm:$0xf]  ;;  %v2489_v12 = vld [vmem:[#allocation8 + $0x240] sm:$0xf] }
  0x7c   :  { %1481 = vmatpush.bf16.msrb.mxu1 %v2574_v58  ;;  %v2430_v23 = vor.u32 %v2817_v55, %v2429_v21  ;;  %v2406_v47 = vor.u32 %v2811_v45, %v2405_v44  ;;  %v2393_v58 = vld [vmem:[#allocation8 + $0x180] sm:$0xf]  ;;  %v2455_v21 = vld [vmem:[#allocation8 + $0x204] sm:$0xf0] }
  0x7d   :  { %1495 = vmatpush.bf16.msrb.mxu2 %v2290_v48  ;;  %v2215_v48 = vld [vmem:[#allocation8 + $0x24] sm:$0xf0] }
  0x7e   :  { %1509 = vmatpush.bf16.msrb.mxu3 %v2386_v60  ;;  %v2218_v49 = vor.u32 %v2762_v46, %v2215_v48  ;;  %v2759_v60 = vld [vmem:[#allocation8 + $0x4] sm:$0xf]  ;;  %v2840_v46 = vld [vmem:[#allocation8 + $0x28c] sm:$0xf] }
  0x7f   :  { %1468 = vmatpush.bf16.msrb.mxu0 %v2466_v59  ;;  %v2808_v59 = vld [vmem:[#allocation8 + $0x188] sm:$0xf0]  ;;  %v2206_v1 = vor.u32 %v2759_v60, %v2203_v62  ;;  %v764_v60 = vperm.slane %v3133_v33, 1  ;;  %v2515_v62 = vld [vmem:[#allocation8 + $0x27c] sm:$0xf0] }
  0x80   :  { %1482 = vmatpush.bf16.msrb.mxu1 %v2562_v6  ;;  %v2394_v61 = vor.u32 %v2808_v59, %v2393_v58  ;;  %v2311_v6 = vld [vmem:[#allocation8 + $0xe4] sm:$0xf0] }
  0x81   :  { %1496 = vmatpush.bf16.msrb.mxu2 %v2278_v0  ;;  %v2479_v0 = vld [vmem:[#allocation8 + $0x234] sm:$0xf0] }
  0x82   :  { %1510 = vmatpush.bf16.msrb.mxu3 %v2374_v8  ;;  %v2482_v2 = vor.u32 %v2828_v63, %v2479_v0  ;;  %v2314_v8 = vor.u32 %v2786_v5, %v2311_v6  ;;  %v2395_v5 = vld [vmem:[#allocation8 + $0x18c] sm:$0xf0] }
  0x83   :  { %1469 = vmatpush.bf16.msrb.mxu0 %v2454_v7  ;;  %v2502_v7 = vor.u32 %v2835_v4, %v2501_v3  ;;  %v2807_v4 = vld [vmem:[#allocation8 + $0x184] sm:$0xf] }
  0x84   :  { %1483 = vmatpush.bf16.msrb.mxu1 %v2550_v17 }
  0x85   :  { %1497 = vmatpush.bf16.msrb.mxu2 %v2266_v9  ;;  %v2825_v9 = vld [vmem:[#allocation8 + $0x214] sm:$0xf] }
  0x86   :  { %1511 = vmatpush.bf16.msrb.mxu3 %v2362_v20  ;;  %v2470_v11 = vor.u32 %v2825_v9, %v2467_v10  ;;  %v2822_v20 = vld [vmem:[#allocation8 + $0x1fc] sm:$0xf] }
  0x87   :  { %1470 = vmatpush.bf16.msrb.mxu0 %v2442_v13  ;;  %v2832_v13 = vld [vmem:[#allocation8 + $0x248] sm:$0xf0]  ;;  %v2458_v55 = vor.u32 %v2822_v20, %v2455_v21 }
  0x88   :  { %1484 = vmatpush.bf16.msrb.mxu1 %v2538_v29  ;;  %v2490_v51 = vor.u32 %v2832_v13, %v2489_v12  ;;  %v2551_v29 = vld [vmem:[#allocation8 + $0x2c4] sm:$0xf0] }
  0x89   :  { %1498 = vmatpush.bf16.msrb.mxu2 %v2254_v14  ;;  %v2783_v14 = vld [vmem:[#allocation8 + $0xc4] sm:$0xf] }
  0x8a   :  { %1512 = vmatpush.bf16.msrb.mxu3 %v2350_v31  ;;  %v2302_v17 = vor.u32 %v2783_v14, %v2299_v15  ;;  %v2554_v31 = vor.u32 %v2846_v28, %v2551_v29  ;;  %v2779_v14 = vld [vmem:[#allocation8 + $0xa0] sm:$0xf0]  ;;  %v2503_v15 = vld [vmem:[#allocation8 + $0x264] sm:$0xf0] }
  0x8b   :  { %1471 = vmatpush.bf16.msrb.mxu0 %v2430_v23  ;;  %v2563_v23 = vld [vmem:[#allocation8 + $0x2dc] sm:$0xf0] }
  0x8c   :  { %1485 = vmatpush.bf16.msrb.mxu1 %v2526_v41  ;;  %v2566_v24 = vor.u32 %v2849_v22, %v2563_v23  ;;  %v2831_v22 = vld [vmem:[#allocation8 + $0x244] sm:$0xf]  ;;  %v2491_v23 = vld [vmem:[#allocation8 + $0x24c] sm:$0xf0] }
  0x8d   :  { %1499 = vmatpush.bf16.msrb.mxu2 %v2242_v25  ;;  %v2819_v25 = vld [vmem:[#allocation8 + $0x1e4] sm:$0xf] }
  0x8e   :  { %1513 = vmatpush.bf16.msrb.mxu3 %v2338_v43  ;;  %v2446_v27 = vor.u32 %v2819_v25, %v2443_v26  ;;  %v2419_v43 = vld [vmem:[#allocation8 + $0x1bc] sm:$0xf0]  ;;  %v2776_v25 = vld [vmem:[#allocation8 + $0x88] sm:$0xf0]  ;;  %v2494_v26 = vor.u32 %v2831_v22, %v2491_v23  ;;  %v2473_v22 = vld [vmem:[#allocation8 + $0x218] sm:$0xf] }
  0x8f   :  { %1472 = vmatpush.bf16.msrb.mxu0 %v2418_v35  ;;  %v2431_v35 = vld [vmem:[#allocation8 + $0x1d4] sm:$0xf0]  ;;  %v2422_v44 = vor.u32 %v2813_v42, %v2419_v43  ;;  %v2827_v23 = vld [vmem:[#allocation8 + $0x220] sm:$0xf0] }
  0x90   :  { %1486 = vmatpush.bf16.msrb.mxu1 %v2514_v54  ;;  %v2434_v36 = vor.u32 %v2816_v34, %v2431_v35  ;;  %v2810_v54 = vld [vmem:[#allocation8 + $0x19c] sm:$0xf]  ;;  %v2257_v34 = vld [vmem:[#allocation8 + $0x68] sm:$0xf]  ;;  %v2773_v35 = vld [vmem:[#allocation8 + $0x70] sm:$0xf0] }
  0x91   :  { %1500 = vmatpush.bf16.msrb.mxu2 %v2230_v37  ;;  %v2843_v37 = vld [vmem:[#allocation8 + $0x2a4] sm:$0xf]  ;;  %v2410_v58 = vor.u32 %v2810_v54, %v2407_v56  ;;  %v2341_v56 = vld [vmem:[#allocation8 + $0x110] sm:$0xf] }
  0x92   :  { %1514 = vmatpush.bf16.msrb.mxu3 %v2326_v57  ;;  %v2542_v41 = vor.u32 %v2843_v37, %v2539_v38  ;;  %v2258_v37 = vor.u32 %v2773_v35, %v2257_v34  ;;  %v2365_v38 = vld [vmem:[#allocation8 + $0x140] sm:$0xf]  ;;  %v2824_v35 = vld [vmem:[#allocation8 + $0x208] sm:$0xf0] }
  0x93   :  { %1473 = vmatpush.bf16.msrb.mxu0 %v2406_v47  ;;  %v2527_v47 = vld [vmem:[#allocation8 + $0x294] sm:$0xf0]  ;;  %v2461_v34 = vld [vmem:[#allocation8 + $0x200] sm:$0xf] }
  0x94   :  { %1487 = vmatpush.bf16.msrb.mxu1 %v2502_v7  ;;  %v2530_v52 = vor.u32 %v2840_v46, %v2527_v47  ;;  %v2398_v7 = vor.u32 %v2807_v4, %v2395_v5  ;;  %v2353_v46 = vld [vmem:[#allocation8 + $0x128] sm:$0xf]  ;;  %v2797_v47 = vld [vmem:[#allocation8 + $0x130] sm:$0xf0]  ;;  %v2329_v4 = vld [vmem:[#allocation8 + $0xf8] sm:$0xf] }
  0x95   :  { %1501 = vmatpush.bf16.msrb.mxu2 %v2218_v49  ;;  %v2791_v5 = vld [vmem:[#allocation8 + $0x100] sm:$0xf0] }
  0x96   :  { %1515 = vmatpush.bf16.msrb.mxu3 %v2314_v8 }
  0x97   :  { %1474 = vmatpush.bf16.msrb.mxu0 %v2394_v61  ;;  %v2837_v61 = vld [vmem:[#allocation8 + $0x274] sm:$0xf] }
  0x98   :  { %1488 = vmatpush.bf16.msrb.mxu1 %v2490_v51  ;;  %v2518_v3 = vor.u32 %v2837_v61, %v2515_v62  ;;  %v2281_v51 = vld [vmem:[#allocation8 + $0x98] sm:$0xf] }
  0x99   :  { %1502 = vmatpush.bf16.msrb.mxu2 %v2206_v1  ;;  %v2293_v1 = vld [vmem:[#allocation8 + $0xb0] sm:$0xf] }
  0x9a   :  { %1516 = vmatpush.bf16.msrb.mxu3 %v2302_v17 }
  0x9b   :  { %1523 = vmatpush.bf16.msra.mxu0 %v2482_v2  ;;  %v2782_v2 = vld [vmem:[#allocation8 + $0xb8] sm:$0xf0] }
  0x9c   :  { %1537 = vmatpush.bf16.msra.mxu1 %v2578_v19  ;;  %v2294_v10 = vor.u32 %v2782_v2, %v2293_v1  ;;  %v2806_v19 = vld [vmem:[#allocation8 + $0x178] sm:$0xf0] }
  0x9d   :  { %v2390_v28 = vor.u32 %v2806_v19, %v2389_v18  ;;  %v2788_v18 = vld [vmem:[#allocation8 + $0xe8] sm:$0xf0] }
  0x9f   :  { %1524 = vmatpush.bf16.msra.mxu0 %v2470_v11  ;;  %v2834_v11 = vld [vmem:[#allocation8 + $0x25c] sm:$0xf] }
  0xa0   :  { %1538 = vmatpush.bf16.msra.mxu1 %v2566_v24  ;;  %v2506_v17 = vor.u32 %v2834_v11, %v2503_v15  ;;  %v2269_v24 = vld [vmem:[#allocation8 + $0x80] sm:$0xf] }
  0xa3   :  { %1525 = vmatpush.bf16.msra.mxu0 %v2458_v55  ;;  %v2282_v55 = vor.u32 %v2779_v14, %v2281_v51  ;;  %v2330_v51 = vor.u32 %v2791_v5, %v2329_v4  ;;  %v2521_v5 = vld [vmem:[#allocation8 + $0x278] sm:$0xf] }
  0xa4   :  { %1539 = vmatpush.bf16.msra.mxu1 %v2554_v31  ;;  %v2377_v31 = vld [vmem:[#allocation8 + $0x158] sm:$0xf] }
  0xa7   :  { %1526 = vmatpush.bf16.msra.mxu0 %v2446_v27 }
  0xa8   :  { %1540 = vmatpush.bf16.msra.mxu1 %v2542_v41  ;;  %v2770_v41 = vld [vmem:[#allocation8 + $0x58] sm:$0xf0] }
  0xab   :  { %1527 = vmatpush.bf16.msra.mxu0 %v2434_v36 }
  0xac   :  { %1541 = vmatpush.bf16.msra.mxu1 %v2530_v52 }
  0xaf   :  { %1528 = vmatpush.bf16.msra.mxu0 %v2422_v44 }
  0xb0   :  { %1542 = vmatpush.bf16.msra.mxu1 %v2518_v3 }
  0xb3   :  { %1529 = vmatpush.bf16.msra.mxu0 %v2410_v58 }
  0xb4   :  { %1543 = vmatpush.bf16.msra.mxu1 %v2506_v17  ;;  %v2317_v17 = vld [vmem:[#allocation8 + $0xe0] sm:$0xf] }
  0xb7   :  { %v630_v30 = vpop.f32.mrf.mxu0  ;;  %1530 = vmatpush.bf16.msra.mxu0 %v2398_v7  ;;  %v2761_v7 = vld [vmem:[#allocation8 + $0x10] sm:$0xf0] }
  0xb8   :  { %v644_v32 = vpop.f32.mrf.mxu1  ;;  %1544 = vmatpush.bf16.msra.mxu1 %v2494_v26  ;;  %v2318_v26 = vor.u32 %v2788_v18, %v2317_v17  ;;  %v2862_v17 = vld [vmem:[#allocation10 + $0x38] sm:$0xff]  ;;  %v2861_v18 = vld [vmem:[#allocation10 + $0x30] sm:$0xff] }
  0xb9   :  { %v645_v39 = vadd.f32 %v644_v32, %v630_v30  ;;  %v2270_v30 = vor.u32 %v2776_v25, %v2269_v24  ;;  %v2803_v32 = vld [vmem:[#allocation8 + $0x160] sm:$0xf0] }
  0xba   :  { %v2378_v36 = vor.u32 %v2803_v32, %v2377_v31  ;;  %v2581_v31 = vld [vmem:[#allocation8 + $0x2f0] sm:$0xf]  ;;  %v2854_v32 = vld [vmem:[#allocation8 + $0x2f8] sm:$0xf0] }
  0xbb   :  { %v771_v48 = vadd.f32 %v763_v40, %v645_v39  ;;  %v2800_v39 = vld [vmem:[#allocation8 + $0x148] sm:$0xf0] }
  0xbc   :  { %v2366_v44 = vor.u32 %v2800_v39, %v2365_v38  ;;  %v2582_v39 = vor.u32 %v2854_v32, %v2581_v31 }
  0xbd   :  { %v779_v63 = vmax.f32 %v771_v48, 0.0  ;;  %v2233_v48 = vld [vmem:[#allocation8 + $0x38] sm:$0xf] }
  0xbf   :  { %v658_v45 = vpop.f32.mrf.mxu2  ;;  %v632_v50 = vpop.f32.mrf.mxu0 }
  0xc0   :  { %v672_v49 = vpop.f32.mrf.mxu3  ;;  %v646_v53 = vpop.f32.mrf.mxu1 }
  0xc1   :  { %v647_v57 = vadd.f32 %v646_v53, %v632_v50  ;;  %v673_v59 = vadd.f32 %v672_v49, %v658_v45  ;;  %v2767_v49 = vld [vmem:[#allocation8 + $0x40] sm:$0xf0]  ;;  %v2354_v50 = vor.u32 %v2797_v47, %v2353_v46  ;;  %v765_v53 = vperm.slane %v3133_v33, 2 }
  0xc2   :  { %v2234_v54 = vor.u32 %v2767_v49, %v2233_v48  ;;  %v2557_v48 = vld [vmem:[#allocation8 + $0x2c0] sm:$0xf]  ;;  %v2848_v49 = vld [vmem:[#allocation8 + $0x2c8] sm:$0xf0] }
  0xc3   :  { %v775_v0 = vadd.f32 %v763_v40, %v647_v57  ;;  %v772_v8 = vadd.f32 %v764_v60, %v673_v59  ;;  %v2245_v40 = vld [vmem:[#allocation8 + $0x50] sm:$0xf]  ;;  %v2794_v57 = vld [vmem:[#allocation8 + $0x118] sm:$0xf0]  ;;  %v2221_v59 = vld [vmem:[#allocation8 + $0x20] sm:$0xf] }
  0xc4   :  { %v2246_v45 = vor.u32 %v2770_v41, %v2245_v40  ;;  %v2462_v41 = vor.u32 %v2824_v35, %v2461_v34  ;;  %v2865_v34 = vld [vmem:[#allocation10 + $0x50] sm:$0xff] }
  0xc5   :  { %v783_v6 = vmax.f32 %v775_v0, 0.0  ;;  %v780_v20 = vmax.f32 %v772_v8, 0.0  ;;  %v2342_v0 = vor.u32 %v2794_v57, %v2341_v56  ;;  %v2845_v56 = vld [vmem:[#allocation8 + $0x2b0] sm:$0xf0]  ;;  %v2425_v57 = vld [vmem:[#allocation8 + $0x1b8] sm:$0xf] }
  0xc6   :  { %v2877_v35 = vld [vmem:[#allocation10 + $0xb0] sm:$0xff] }
  0xc7   :  { %v660_v9 = vpop.f32.mrf.mxu2  ;;  %v3137_v12 = vpack.c.bf16 %v783_v6, %v779_v63  ;;  %v2209_v6 = vld [vmem:[#allocation8 + $0x8] sm:$0xf] }
  0xc8   :  { %v674_v13 = vpop.f32.mrf.mxu3 }
  0xc9   :  { %v675_v16 = vadd.f32 %v674_v13, %v660_v9  ;;  %1447 = vmatmul.bf16.vlgmr.msra.gmra.mxu2 %v3137_v12  ;;  %v2485_v9 = vld [vmem:[#allocation8 + $0x230] sm:$0xf]  ;;  %v766_v13 = vperm.slane %v3133_v33, 3  ;;  %v2305_v33 = vld [vmem:[#allocation8 + $0xc8] sm:$0xf] }
  0xca   :  { %1551 = vmatpush.bf16.msra.mxu2 %v2294_v10  ;;  %v2830_v10 = vld [vmem:[#allocation8 + $0x238] sm:$0xf0] }
  0xcb   :  { %v776_v21 = vadd.f32 %v764_v60, %v675_v16  ;;  %v2764_v60 = vld [vmem:[#allocation8 + $0x28] sm:$0xf0]  ;;  %v2210_v16 = vor.u32 %v2761_v7, %v2209_v6  ;;  %v2839_v6 = vld [vmem:[#allocation8 + $0x280] sm:$0xf0]  ;;  %v2401_v7 = vld [vmem:[#allocation8 + $0x188] sm:$0xf] }
  0xcc   :  { %v2222_v3 = vor.u32 %v2764_v60, %v2221_v59 }
  0xcd   :  { %v784_v27 = vmax.f32 %v776_v21, 0.0 }
  0xce   :  { %1552 = vmatpush.bf16.msra.mxu2 %v2282_v55 }
  0xcf   :  { %v3140_v29 = vpack.c.bf16 %v784_v27, %v780_v20  ;;  %v2486_v20 = vor.u32 %v2830_v10, %v2485_v9  ;;  %v2785_v27 = vld [vmem:[#allocation8 + $0xd0] sm:$0xf0]  ;;  %v2522_v9 = vor.u32 %v2839_v6, %v2521_v5 }
  0xd0   :  { %v2306_v38 = vor.u32 %v2785_v27, %v2305_v33  ;;  %v2867_v33 = vld [vmem:[#allocation10 + $0x60] sm:$0xff] }
  0xd1   :  { %1461 = vmatmul.bf16.vlgmr.msra.gmra.mxu3 %v3140_v29 }
  0xd2   :  { %1565 = vmatpush.bf16.msra.mxu3 %v2390_v28  ;;  %1553 = vmatpush.bf16.msra.mxu2 %v2270_v30  ;;  %v2474_v30 = vor.u32 %v2827_v23, %v2473_v22  ;;  %v2870_v22 = vld [vmem:[#allocation10 + $0x78] sm:$0xff]  ;;  %v2857_v23 = vld [vmem:[#allocation10 + $0x10] sm:$0xff] }
  0xd6   :  { %1566 = vmatpush.bf16.msra.mxu3 %v2378_v36  ;;  %1554 = vmatpush.bf16.msra.mxu2 %v2258_v37 }
  0xd7   :  { %v686_v42 = vpop.f32.mrf.mxu0 }
  0xd8   :  { %v700_v43 = vpop.f32.mrf.mxu1 }
  0xd9   :  { %1503 = vmatmul.bf16.vlgmr.msrb.gmra.mxu2 %v3137_v12  ;;  %v701_v52 = vadd.f32 %v700_v43, %v686_v42  ;;  %v2569_v42 = vld [vmem:[#allocation8 + $0x2d8] sm:$0xf]  ;;  %v2851_v43 = vld [vmem:[#allocation8 + $0x2e0] sm:$0xf0] }
  0xda   :  { %1567 = vmatpush.bf16.msra.mxu3 %v2366_v44  ;;  %1555 = vmatpush.bf16.msra.mxu2 %v2246_v45  ;;  %v2449_v44 = vld [vmem:[#allocation8 + $0x1e8] sm:$0xf]  ;;  %v2821_v45 = vld [vmem:[#allocation8 + $0x1f0] sm:$0xf0]  ;;  %v2570_v46 = vor.u32 %v2851_v43, %v2569_v42  ;;  %v2863_v43 = vld [vmem:[#allocation10 + $0x40] sm:$0xff] }
  0xdb   :  { %v773_v1 = vadd.f32 %v765_v53, %v701_v52  ;;  %v2450_v47 = vor.u32 %v2821_v45, %v2449_v44  ;;  %v2558_v52 = vor.u32 %v2848_v49, %v2557_v48  ;;  %v2875_v44 = vld [vmem:[#allocation10 + $0xa0] sm:$0xff] }
  0xdd   :  { %v781_v14 = vmax.f32 %v773_v1, 0.0  ;;  %v2413_v1 = vld [vmem:[#allocation8 + $0x1a0] sm:$0xf] }
  0xde   :  { %1568 = vmatpush.bf16.msra.mxu3 %v2354_v50  ;;  %1556 = vmatpush.bf16.msra.mxu2 %v2234_v54  ;;  %v2818_v50 = vld [vmem:[#allocation8 + $0x1d8] sm:$0xf0]  ;;  %v2545_v54 = vld [vmem:[#allocation8 + $0x2a8] sm:$0xf] }
  0xdf   :  { %v714_v58 = vpop.f32.mrf.mxu2  ;;  %v688_v62 = vpop.f32.mrf.mxu0 }
  0xe0   :  { %v728_v61 = vpop.f32.mrf.mxu3  ;;  %v702_v63 = vpop.f32.mrf.mxu1 }
  0xe1   :  { %v703_v2 = vadd.f32 %v702_v63, %v688_v62  ;;  %1517 = vmatmul.bf16.vlgmr.msrb.gmra.mxu3 %v3140_v29  ;;  %v729_v11 = vadd.f32 %v728_v61, %v714_v58  ;;  %v2815_v58 = vld [vmem:[#allocation8 + $0x1c0] sm:$0xf0]  ;;  %v2546_v61 = vor.u32 %v2845_v56, %v2545_v54  ;;  %v2533_v63 = vld [vmem:[#allocation8 + $0x290] sm:$0xf] }
  0xe2   :  { %1569 = vmatpush.bf16.msra.mxu3 %v2342_v0  ;;  %1557 = vmatpush.bf16.msra.mxu2 %v2222_v3  ;;  %v2842_v0 = vld [vmem:[#allocation8 + $0x298] sm:$0xf0] }
  0xe3   :  { %v777_v8 = vadd.f32 %v765_v53, %v703_v2  ;;  %v774_v24 = vadd.f32 %v766_v13, %v729_v11  ;;  %v2812_v2 = vld [vmem:[#allocation8 + $0x1a8] sm:$0xf0]  ;;  %v2534_v3 = vor.u32 %v2842_v0, %v2533_v63  ;;  %v2509_v11 = vld [vmem:[#allocation8 + $0x260] sm:$0xf] }
  0xe4   :  { %v2414_v4 = vor.u32 %v2812_v2, %v2413_v1  ;;  %v2871_v0 = vld [vmem:[#allocation10 + $0x80] sm:$0xff] }
  0xe5   :  { %v785_v15 = vmax.f32 %v777_v8, 0.0  ;;  %v782_v36 = vmax.f32 %v774_v24, 0.0  ;;  %v2809_v8 = vld [vmem:[#allocation8 + $0x190] sm:$0xf0] }
  0xe6   :  { %1570 = vmatpush.bf16.msra.mxu3 %v2330_v51  ;;  %1558 = vmatpush.bf16.msra.mxu2 %v2210_v16  ;;  %v2402_v10 = vor.u32 %v2809_v8, %v2401_v7  ;;  %v2869_v24 = vld [vmem:[#allocation10 + $0x70] sm:$0xff] }
  0xe7   :  { %v716_v19 = vpop.f32.mrf.mxu2  ;;  %v3147_v21 = vpack.c.bf16 %v785_v15, %v781_v14  ;;  %v2497_v14 = vld [vmem:[#allocation8 + $0x248] sm:$0xf]  ;;  %v2833_v15 = vld [vmem:[#allocation8 + $0x250] sm:$0xf0] }
  0xe8   :  { %v730_v55 = vpop.f32.mrf.mxu3  ;;  %v2498_v16 = vor.u32 %v2833_v15, %v2497_v14 }
  0xe9   :  { %v731_v25 = vadd.f32 %v730_v55, %v716_v19  ;;  %1475 = vmatmul.bf16.vlgmr.msrb.gmra.mxu0 %v3147_v21  ;;  %1559 = vmatmul.bf16.vlgmr.msra.gmra.mxu2 %v3137_v12  ;;  %v2437_v12 = vld [vmem:[#allocation8 + $0x1d0] sm:$0xf]  ;;  %v2860_v19 = vld [vmem:[#allocation10 + $0x28] sm:$0xff]  ;;  %v2858_v55 = vld [vmem:[#allocation10 + $0x18] sm:$0xff] }
  0xea   :  { %1579 = vmatpush.bf16.msrb.mxu0 %v2486_v20  ;;  %1571 = vmatpush.bf16.msra.mxu3 %v2318_v26  ;;  %v2438_v53 = vor.u32 %v2818_v50, %v2437_v12  ;;  %v2859_v20 = vld [vmem:[#allocation10 + $0x20] sm:$0xff]  ;;  %v2873_v50 = vld [vmem:[#allocation10 + $0x90] sm:$0xff] }
  0xeb   :  { %v778_v28 = vadd.f32 %v766_v13, %v731_v25  ;;  %v2836_v13 = vld [vmem:[#allocation8 + $0x268] sm:$0xf0]  ;;  %1812 = vmatpush.bf16.msrb.mxu2 %v2862_v17  ;;  %v2855_v26 = vld [vmem:[#allocation10] sm:$0xff] }
  0xec   :  { %v2510_v51 = vor.u32 %v2836_v13, %v2509_v11  ;;  %v2868_v25 = vld [vmem:[#allocation10 + $0x68] sm:$0xff] }
  0xed   :  { %v786_v37 = vmax.f32 %v778_v28, 0.0  ;;  %v2866_v28 = vld [vmem:[#allocation10 + $0x58] sm:$0xff] }
  0xee   :  { %1580 = vmatpush.bf16.msrb.mxu0 %v2474_v30  ;;  %1572 = vmatpush.bf16.msra.mxu3 %v2306_v38  ;;  %v2878_v30 = vld [vmem:[#allocation10 + $0xb8] sm:$0xff] }
  0xef   :  { %v790_v40 = vpack.c.bf16 %v786_v37, %v782_v36  ;;  %1813 = vmatpush.bf16.msrb.mxu2 %v2861_v18  ;;  %v2864_v36 = vld [vmem:[#allocation10 + $0x48] sm:$0xff] }
  0xf0   :  { %v2876_v37 = vld [vmem:[#allocation10 + $0xa8] sm:$0xff] }
  0xf1   :  { %1489 = vmatmul.bf16.vlgmr.msrb.gmra.mxu1 %v790_v40  ;;  %1573 = vmatmul.bf16.vlgmr.msra.gmra.mxu3 %v3140_v29  ;;  %v2426_v29 = vor.u32 %v2815_v58, %v2425_v57  ;;  %v2872_v58 = vld [vmem:[#allocation10 + $0x88] sm:$0xff] }
  0xf2   :  { %1593 = vmatpush.bf16.msrb.mxu1 %v2582_v39  ;;  %1581 = vmatpush.bf16.msrb.mxu0 %v2462_v41  ;;  %v3163_v39 = vld [vmem:[%s3181_s4] sm:$0x7] }
  0xf3   :  { %1814 = vmatpush.bf16.msrb.mxu2 %v2860_v19  ;;  %1826 = vmatpush.bf16.msrb.mxu3 %v2870_v22  ;;  %v921_v45 = vperm.slane %v3163_v39, 0 }
  0xf6   :  { %1594 = vmatpush.bf16.msrb.mxu1 %v2570_v46  ;;  %1582 = vmatpush.bf16.msrb.mxu0 %v2450_v47  ;;  %v2874_v46 = vld [vmem:[#allocation10 + $0x98] sm:$0xff] }
  0xf7   :  { %v742_v59 = vpop.f32.mrf.mxu0  ;;  %1815 = vmatpush.bf16.msrb.mxu2 %v2859_v20  ;;  %1827 = vmatpush.bf16.msrb.mxu3 %v2869_v24 }
  0xf8   :  { %v756_v60 = vpop.f32.mrf.mxu1 }
  0xf9   :  { %1531 = vmatmul.bf16.vlgmr.msra.gmra.mxu0 %v3147_v21  ;;  %v3153_v62 = vadd.f32 %v756_v60, %v742_v59 }
  0xfa   :  { %1595 = vmatpush.bf16.msrb.mxu1 %v2558_v52  ;;  %1583 = vmatpush.bf16.msrb.mxu0 %v2438_v53 }
  0xfb   :  { %1816 = vmatpush.bf16.msrb.mxu2 %v2858_v55  ;;  %1828 = vmatpush.bf16.msrb.mxu3 %v2868_v25 }
  0xfe   :  { %1596 = vmatpush.bf16.msrb.mxu1 %v2546_v61  ;;  %1584 = vmatpush.bf16.msrb.mxu0 %v2426_v29 }
  0xff   :  { %1817 = vmatpush.bf16.msrb.mxu2 %v2857_v23  ;;  %1829 = vmatpush.bf16.msrb.mxu3 %v2867_v33  ;;  %v3156_v32 = vpop.f32.mrf.mxu0  ;;  %v923_v23 = vperm.slane %v3163_v39, 2 }
 0x100   :  { %v3158_v38 = vpop.f32.mrf.mxu1 }
 0x101   :  { %1545 = vmatmul.bf16.vlgmr.msra.gmra.mxu1 %v790_v40 }
 0x102   :  { %1597 = vmatpush.bf16.msrb.mxu1 %v2534_v3  ;;  %1585 = vmatpush.bf16.msrb.mxu0 %v2414_v4  ;;  %v922_v4 = vperm.slane %v3163_v39, 1 }
 0x103   :  { %1830 = vmatpush.bf16.msrb.mxu3 %v2866_v28 }
 0x106   :  { %1598 = vmatpush.bf16.msrb.mxu1 %v2522_v9  ;;  %1586 = vmatpush.bf16.msrb.mxu0 %v2402_v10 }
 0x107   :  { %1831 = vmatpush.bf16.msrb.mxu3 %v2865_v34 }
 0x109   :  { %1587 = vmatmul.bf16.vlgmr.msrb.gmra.mxu0 %v3147_v21  ;;  %v2856_v21 = vld [vmem:[#allocation10 + $0x8] sm:$0xff] }
 0x10a   :  { %1599 = vmatpush.bf16.msrb.mxu1 %v2510_v51  ;;  %1818 = vmatpush.bf16.msrb.mxu2 %v2856_v21 }
 0x10b   :  { %1840 = vmatpush.bf16.msra.mxu0 %v2878_v30  ;;  %1832 = vmatpush.bf16.msrb.mxu3 %v2864_v36 }
 0x10e   :  { %1600 = vmatpush.bf16.msrb.mxu1 %v2498_v16  ;;  %1819 = vmatpush.bf16.msrb.mxu2 %v2855_v26 }
 0x10f   :  { %1841 = vmatpush.bf16.msra.mxu0 %v2877_v35  ;;  %1833 = vmatpush.bf16.msrb.mxu3 %v2863_v43 }
 0x111   :  { %1601 = vmatmul.bf16.vlgmr.msrb.gmra.mxu1 %v790_v40 }
 0x113   :  { %1842 = vmatpush.bf16.msra.mxu0 %v2876_v37 }
 0x117   :  { %1843 = vmatpush.bf16.msra.mxu0 %v2875_v44  ;;  %v2895_v44 = vld [vmem:[%s3183_s6] ss:$0 sm:$0xff]  ;;  %s3062_s6 = smov 128  }
 0x11b   :  { %1844 = vmatpush.bf16.msra.mxu0 %v2874_v46 }
 0x11f   :  { %1845 = vmatpush.bf16.msra.mxu0 %v2873_v50 }
 0x123   :  { %1846 = vmatpush.bf16.msra.mxu0 %v2872_v58 }
 0x127   :  { %1847 = vmatpush.bf16.msra.mxu0 %v2871_v0 }
 0x14c   :  { %v1448_v27 = vpop.f32.mrf.mxu2 }
 0x14d   :  { %v1449_v47 = vadd.f32 %v1448_v27, %v921_v45 }
 0x154   :  { %v1462_v31 = vpop.f32.mrf.mxu3  ;;  %v1450_v40 = vpop.f32.mrf.mxu2 }
 0x155   :  { %v1463_v52 = vadd.f32 %v1462_v31, %v1449_v47  ;;  %v1451_v53 = vadd.f32 %v1450_v40, %v921_v45 }
 0x15c   :  { %v1464_v42 = vpop.f32.mrf.mxu3  ;;  %v1504_v12 = vpop.f32.mrf.mxu2 }
 0x15d   :  { %v1465_v56 = vadd.f32 %v1464_v42, %v1451_v53  ;;  %v1505_v8 = vadd.f32 %v1504_v12, %v922_v4 }
 0x164   :  { %v1518_v54 = vpop.f32.mrf.mxu3  ;;  %v1506_v3 = vpop.f32.mrf.mxu2 }
 0x165   :  { %v1519_v10 = vadd.f32 %v1518_v54, %v1505_v8  ;;  %v1507_v11 = vadd.f32 %v1506_v3, %v922_v4 }
 0x166   :  { %v1476_v41 = vpop.f32.mrf.mxu0 }
 0x167   :  { %v1477_v57 = vadd.f32 %v1476_v41, %v1463_v52 }
 0x16c   :  { %v1520_v6 = vpop.f32.mrf.mxu3  ;;  %v1560_v14 = vpop.f32.mrf.mxu2 }
 0x16d   :  { %v1521_v13 = vadd.f32 %v1520_v6, %v1507_v11  ;;  %v1561_v26 = vadd.f32 %v1560_v14, %v923_v23 }
 0x16e   :  { %v1490_v48 = vpop.f32.mrf.mxu1  ;;  %v1478_v49 = vpop.f32.mrf.mxu0 }
 0x16f   :  { %v1491_v59 = vadd.f32 %v1490_v48, %v1477_v57  ;;  %v1479_v60 = vadd.f32 %v1478_v49, %v1465_v56  ;;  %v759_v57 = vadd.f32 %v3158_v38, %v3156_v32 }
 0x171   :  { %v1607_v1 = vmax.f32 %v1491_v59, 0.0 }
 0x174   :  { %v1574_v17 = vpop.f32.mrf.mxu3  ;;  %v1562_v21 = vpop.f32.mrf.mxu2 }
 0x175   :  { %v1575_v27 = vadd.f32 %v1574_v17, %v1561_v26  ;;  %v1563_v28 = vadd.f32 %v1562_v21, %v923_v23 }
 0x176   :  { %v1492_v61 = vpop.f32.mrf.mxu1  ;;  %v1532_v63 = vpop.f32.mrf.mxu0 }
 0x177   :  { %v1493_v29 = vadd.f32 %v1492_v61, %v1479_v60  ;;  %v1533_v51 = vadd.f32 %v1532_v63, %v1519_v10 }
 0x179   :  { %v1610_v2 = vmax.f32 %v1493_v29, 0.0 }
 0x17b   :  { %v1613_v5 = vpack.c.bf16 %v1610_v2, %v1607_v1 }
 0x17c   :  { %v1576_v33 = vpop.f32.mrf.mxu3 }
 0x17d   :  { %1820 = vmatmul.bf16.vlgmr.msrb.gmra.mxu2 %v1613_v5  ;;  %v1577_v31 = vadd.f32 %v1576_v33, %v1563_v28 }
 0x17e   :  { %v1546_v7 = vpop.f32.mrf.mxu1  ;;  %v1534_v9 = vpop.f32.mrf.mxu0 }
 0x17f   :  { %v1547_v15 = vadd.f32 %v1546_v7, %v1533_v51  ;;  %v1535_v16 = vadd.f32 %v1534_v9, %v1521_v13 }
 0x181   :  { %v1608_v55 = vmax.f32 %v1547_v15, 0.0 }
 0x186   :  { %v1548_v18 = vpop.f32.mrf.mxu1  ;;  %v1588_v20 = vpop.f32.mrf.mxu0 }
 0x187   :  { %v1549_v19 = vadd.f32 %v1548_v18, %v1535_v16  ;;  %v1589_v34 = vadd.f32 %v1588_v20, %v1575_v27 }
 0x189   :  { %v1611_v22 = vmax.f32 %v1549_v19, 0.0 }
 0x18b   :  { %v1614_v24 = vpack.c.bf16 %v1611_v22, %v1608_v55 }
 0x18d   :  { %1834 = vmatmul.bf16.vlgmr.msrb.gmra.mxu3 %v1614_v24 }
 0x18e   :  { %v1602_v25 = vpop.f32.mrf.mxu1  ;;  %v1590_v30 = vpop.f32.mrf.mxu0 }
 0x18f   :  { %v1603_v35 = vadd.f32 %v1602_v25, %v1589_v34  ;;  %v1591_v36 = vadd.f32 %v1590_v30, %v1577_v31 }
 0x191   :  { %v1609_v41 = vmax.f32 %v1603_v35, 0.0 }
 0x196   :  { %v1604_v37 = vpop.f32.mrf.mxu1 }
 0x197   :  { %v1605_v40 = vadd.f32 %v1604_v37, %v1591_v36 }
 0x199   :  { %v1612_v42 = vmax.f32 %v1605_v40, 0.0 }
 0x19b   :  { %v1615_v43 = vpack.c.bf16 %v1612_v42, %v1609_v41 }
 0x19d   :  { %1848 = vmatmul.bf16.vlgmr.msra.gmra.mxu0 %v1615_v43 }
 0x200   :  { %v1821_v39 = vpop.f32.mrf.mxu2 }
 0x201   :  { %v1822_v46 = vadd.f32 %v2895_v44, %v1821_v39 }
 0x208   :  { %v1823_v12 = vpop.f32.mrf.mxu2 }
 0x209   :  { %v1824_v53 = vadd.f32 %v2895_v44, %v1823_v12 }
 0x210   :  { %v1835_v45 = vpop.f32.mrf.mxu3 }
 0x211   :  { %v1836_v47 = vadd.f32 %v1835_v45, %v1822_v46 }
 0x218   :  { %v1837_v52 = vpop.f32.mrf.mxu3 }
 0x219   :  { %v1838_v54 = vadd.f32 %v1837_v52, %v1824_v53 }
 0x21a   :  { %v1849_v48 = vpop.f32.mrf.mxu0 }
 0x21b   :  { %v1850_v49 = vadd.f32 %v1849_v48, %v1836_v47 }
 0x21d   :  { %v1854_v50 = vadd.f32 %v1850_v49, %v3153_v62 }
 0x21f   :  { %1856 = vst [vmem:[#allocation11] sm:$0xff] %v1854_v50 }
 0x222   :  { %v1851_v56 = vpop.f32.mrf.mxu0 }
 0x223   :  { %v1852_v58 = vadd.f32 %v1851_v56, %v1838_v54 }
 0x225   :  { %v1855_v59 = vadd.f32 %v1852_v58, %v759_v57 }
 0x227   :  { %1857 = vst [vmem:[#allocation11 + $0x8] sm:$0xff] %v1855_v59 }
 0x228   :  { %1870 = dma.vmem_to_hbm [thread:$0]  %s1863_s10, 256, %s1865_s13, [#allocation4], %s3062_s6, %s3062_s6, %s3063_s14  }
 0x229   :  { %3046 = dma.done.wait [#allocation4], 256  }
 0x22a   :  { %3047 = vsyncadd [#allocation4], 4294967040 }
 0x22b   :  { %1875 = vsyncpa [#allocation3], 1 }
 0x22c   :  { %1876 = vsyncpa [#allocation6], 1 }
 0x22d   :  { %1877 = vsyncpa [#allocation9], 1 }
 0x22e   :  { %1878 = vsyncpa [#allocation4], 1 }

</bundles_post_ra>
